<compile_context>
chip_gen: v7x
topology: tpu7x:2x2x1
jax: 0.10.0
libtpu: 0.0.40
codegen_flags: <defaults>
</compile_context>

<pallas_src>
import functools

import jax
import jax.numpy as jnp
from jax.experimental import pallas as pl
from jax.experimental.pallas import tpu as pltpu

EPS = 1e-5
LANE = 128


def _round_up(x, m):
    return (x + m - 1) // m * m


# ----------------------------------------------------------------------------
# Fused Pallas kernel: all Postnet layers for one batch element per grid step.
# ----------------------------------------------------------------------------
def _postnet_fused_kernel(x_ref, *refs, ksize, pad, n_layers, t_len, widths_in):
    # refs layout: [w_0, s_0, b_0, ..., w_{L-1}, s_{L-1}, b_{L-1},
    #               o_ref, buf_in, buf_a, buf_b]
    # x_ref : (1, T, c_in_pad0)            bf16  lane-dense, channel-prepadded
    # w_j   : (K*c_in_pad_j, c_out_pad_j)  bf16  im2col weights (VMEM-resident)
    # s_j   : (1, c_out_pad_j)             f32   folded BN scale
    # b_j   : (1, c_out_pad_j)             f32   folded bias
    # o_ref : (1, T, c_out_pad_last)       bf16  lane-dense output tile
    # buf_* : (T + 2*pad, width)           bf16  VMEM activation buffers
    layer_refs = [refs[3 * j: 3 * j + 3] for j in range(n_layers)]
    o_ref = refs[3 * n_layers]
    buf_in, buf_a, buf_b = refs[3 * n_layers + 1: 3 * n_layers + 4]

    # Zero ONLY the 2*pad halo rows of each scratch buffer (the conv's 'same'
    # zero padding).  Interior rows and padded channel columns are fully
    # overwritten every layer/step, so no full-buffer memset is needed.  Done
    # per grid step (a handful of tiny rows -> negligible vst work) rather
    # than under pl.when(program_id == 0) so it stays correct even if the
    # parallel batch axis is sharded across TensorCores.
    for buf in (buf_in, buf_a, buf_b):
        width = buf.shape[1]
        buf[pl.ds(0, pad), :] = jnp.zeros((pad, width), buf.dtype)
        buf[pl.ds(pad + t_len, pad), :] = jnp.zeros((pad, width), buf.dtype)

    # Stage the bf16 input tile straight into the interior of buf_in
    # (no f32 cast, no in-kernel channel pad).
    buf_in[pl.ds(pad, t_len), :] = x_ref[0]

    def conv_bn(x_full, w_ref, s_ref, b_ref, w_in):
        # x_full: (t_len + 2*pad, w_in) bf16 value.
        if w_in >= 256:
            # Wide channels: accumulate K separate MXU dots.  Each contraction
            # (>= 256) still covers full MXU depth and the (T, K*w_in) im2col
            # temp is never materialized in VMEM.
            acc = jnp.dot(x_full[0:t_len, :], w_ref[pl.ds(0, w_in), :],
                          preferred_element_type=jnp.float32)
            for k in range(1, ksize):
                acc = acc + jnp.dot(x_full[k:k + t_len, :],
                                    w_ref[pl.ds(k * w_in, w_in), :],
                                    preferred_element_type=jnp.float32)
        else:
            # Narrow channels (one lane group): a single long-contraction
            # im2col matmul keeps the MXU pipe full; operands stay bf16.
            cols = jnp.concatenate(
                [x_full[k:k + t_len, :] for k in range(ksize)], axis=-1)
            acc = jnp.dot(cols, w_ref[...], preferred_element_type=jnp.float32)
        return acc * s_ref[...] + b_ref[...]            # f32 BN epilogue

    # ---- layer 0: c_in_pad0 -> c_mid_pad ----
    w0, s0, b0 = layer_refs[0]
    y = conv_bn(buf_in[...], w0, s0, b0, widths_in[0])
    if n_layers == 1:
        o_ref[0] = y.astype(o_ref.dtype)
        return
    # TODO(synk): on v6e/v7x (bf16 EUP) tanh could run in bf16; kept f32 for
    # v5e compatibility (no bf16 VPU/EUP there).
    buf_a[pl.ds(pad, t_len), :] = jnp.tanh(y).astype(buf_a.dtype)

    # ---- hidden + final layers: ping-pong through VMEM, static unroll ----
    pp = (buf_a, buf_b)
    cur = 0
    for j in range(1, n_layers):
        wj, sj, bj = layer_refs[j]
        y = conv_bn(pp[cur][...], wj, sj, bj, widths_in[j])
        if j < n_layers - 1:
            dst = pp[1 - cur]
            dst[pl.ds(pad, t_len), :] = jnp.tanh(y).astype(dst.dtype)
            cur = 1 - cur
        else:
            o_ref[0] = y.astype(o_ref.dtype)            # only HBM write (bf16)


def postnet_pallas(x_btc, packed, *, ksize):
    """x_btc: (B, T, c_in_pad0) bf16 (lane-dense, channel-prepadded).
    packed: per-layer (w, scale, bias): w (K*c_in_pad_j, c_out_pad_j) bf16,
    scale/bias (1, c_out_pad_j) f32.  Returns (B, T, c_out_pad_last) bf16."""
    B, T, c_in_pad0 = x_btc.shape
    n_layers = len(packed)
    pad = (ksize - 1) // 2

    widths_in = [w.shape[0] // ksize for (w, _, _) in packed]
    widths_out = [w.shape[1] for (w, _, _) in packed]
    assert widths_in[0] == c_in_pad0
    for j in range(1, n_layers):
        assert widths_in[j] == widths_out[j - 1]
    c_mid_pad = widths_out[0] if n_layers > 1 else c_in_pad0
    c_out_last = widths_out[-1]

    kern = functools.partial(
        _postnet_fused_kernel, ksize=ksize, pad=pad, n_layers=n_layers,
        t_len=T, widths_in=tuple(widths_in))

    in_specs = [pl.BlockSpec((1, T, c_in_pad0), lambda b: (b, 0, 0))]
    flat_inputs = [x_btc]
    for (w, s, bb) in packed:
        # Constant block index across the batch grid -> weights / folded BN
        # params are DMA'd into VMEM once and stay resident for every step.
        in_specs.append(pl.BlockSpec(w.shape, lambda b: (0, 0)))
        in_specs.append(pl.BlockSpec(s.shape, lambda b: (0, 0)))
        in_specs.append(pl.BlockSpec(bb.shape, lambda b: (0, 0)))
        flat_inputs += [w, s, bb]

    # VMEM limit computed from the actual resident footprint with headroom.
    w_bytes = sum(int(w.size) * 2 + int(s.size) * 4 + int(bb.size) * 4
                  for (w, s, bb) in packed)
    scratch_bytes = (T + 2 * pad) * (c_in_pad0 + 2 * c_mid_pad) * 2
    io_bytes = 2 * T * c_in_pad0 * 2 + 2 * T * c_out_last * 2      # double-buffered blocks
    temp_bytes = T * ksize * max(widths_in) * 2 + 2 * T * max(widths_out) * 4
    vmem_limit = int((w_bytes + scratch_bytes + io_bytes + temp_bytes) * 1.5) + (8 << 20)
    # TODO(synk): on v7x keep this <= ~48 MiB and use the T-tiled grid instead.
    vmem_limit = max(32 << 20, min(vmem_limit, 96 << 20))

    return pl.pallas_call(
        kern,
        out_shape=jax.ShapeDtypeStruct((B, T, c_out_last), jnp.bfloat16),
        grid_spec=pltpu.PrefetchScalarGridSpec(
            num_scalar_prefetch=0,
            grid=(B,),
            in_specs=in_specs,
            out_specs=pl.BlockSpec((1, T, c_out_last), lambda b: (b, 0, 0)),
            scratch_shapes=[
                pltpu.VMEM((T + 2 * pad, c_in_pad0), jnp.bfloat16),   # input halo buf
                pltpu.VMEM((T + 2 * pad, c_mid_pad), jnp.bfloat16),   # ping
                pltpu.VMEM((T + 2 * pad, c_mid_pad), jnp.bfloat16),   # pong
            ],
        ),
        compiler_params=pltpu.CompilerParams(
            dimension_semantics=("parallel",),
            vmem_limit_bytes=vmem_limit,
        ),
    )(*flat_inputs)


# ----------------------------------------------------------------------------
# Parameter construction (deterministic, mirrors Postnet.__init__ shapes)
# ----------------------------------------------------------------------------
def make_layer_params(key, c_in, c_out, ksize):
    ks = jax.random.split(key, 6)
    w = 0.1 * jax.random.normal(ks[0], (c_out, c_in, ksize), jnp.float32)   # Conv1d weight (OIW)
    b = 0.1 * jax.random.normal(ks[1], (c_out,), jnp.float32)               # Conv1d bias
    gamma = 1.0 + 0.1 * jax.random.normal(ks[2], (c_out,), jnp.float32)     # BN weight
    beta = 0.1 * jax.random.normal(ks[3], (c_out,), jnp.float32)            # BN bias
    mean = 0.1 * jax.random.normal(ks[4], (c_out,), jnp.float32)            # BN running_mean
    var = jax.random.uniform(ks[5], (c_out,), jnp.float32, 0.5, 1.5)        # BN running_var
    return dict(w=w, b=b, gamma=gamma, beta=beta, mean=mean, var=var)


def fold_and_pack_params(layer_params, ksize, lane=LANE):
    """Precompute ONCE (outside the forward path): fold conv bias + eval-mode
    BN into per-channel scale/bias, transpose weights to (K, Cin, Cout),
    zero-pad each layer's channel dims only to the next lane multiple (so the
    first/last layers stay 128-wide), and flatten to lane-dense 2D weights."""
    packed = []
    for p in layer_params:
        c_out, c_in, k = p["w"].shape
        assert k == ksize
        c_in_pad = _round_up(c_in, lane)
        c_out_pad = _round_up(c_out, lane)
        inv_std = 1.0 / jnp.sqrt(p["var"] + EPS)
        scale = p["gamma"] * inv_std                               # (Cout,)
        bias = p["beta"] + scale * (p["b"] - p["mean"])            # (Cout,)
        w_kio = jnp.transpose(p["w"], (2, 1, 0))                   # (K, Cin, Cout)
        w_pad = jnp.zeros((ksize, c_in_pad, c_out_pad), jnp.float32)
        w_pad = w_pad.at[:, :c_in, :c_out].set(w_kio)
        # NOTE: zero padding of weights/scale/bias guarantees padded output
        # columns are exactly zero (wrapper slice relies on this).
        w2d = w_pad.reshape(ksize * c_in_pad, c_out_pad).astype(jnp.bfloat16)
        s = jnp.zeros((1, c_out_pad), jnp.float32).at[0, :c_out].set(scale)
        b = jnp.zeros((1, c_out_pad), jnp.float32).at[0, :c_out].set(bias)
        packed.append((w2d, s, b))
    return packed


# ----------------------------------------------------------------------------
# Postnet forward (inference mode)
# ----------------------------------------------------------------------------
def postnet_forward(x_nct, packed, *, n_mel, ksize):
    # x_nct: (B, number_mel_channels, T) -- PyTorch NCW layout.
    B, C, T = x_nct.shape
    c_in_pad0 = packed[0][0].shape[0] // ksize
    # NCW -> BTC, lane-pad channels to 128 and cast to bf16 in one fused XLA
    # op so the kernel's input DMA is lane-dense (no in-kernel pad/cast).
    x_btc = jnp.transpose(x_nct, (0, 2, 1))
    x_btc = jnp.pad(x_btc, ((0, 0), (0, 0), (0, c_in_pad0 - C))).astype(jnp.bfloat16)
    out_pad = postnet_pallas(x_btc, packed, ksize=ksize)
    return jnp.transpose(out_pad[:, :, :n_mel], (0, 2, 1))        # (B, C, T) bf16


# ----------------------------------------------------------------------------
# Pure-JAX f32 reference (for correctness check)
# ----------------------------------------------------------------------------
def postnet_reference(x_nct, layer_params, ksize):
    pad = (ksize - 1) // 2
    x = x_nct
    n = len(layer_params)
    for j, p in enumerate(layer_params):
        y = jax.lax.conv_general_dilated(
            x, p["w"], window_strides=(1,), padding=[(pad, pad)],
            dimension_numbers=("NCH", "OIH", "NCH"))
        y = y + p["b"][None, :, None]
        y = (p["gamma"][None, :, None] * (y - p["mean"][None, :, None])
             / jnp.sqrt(p["var"][None, :, None] + EPS) + p["beta"][None, :, None])
        if j < n - 1:
            y = jnp.tanh(y)
        x = y
    return x


if __name__ == "__main__":
    # Small config consistent with Postnet.__init__
    class Config:
        number_mel_channels = 16
        postnet_dim_emb = 32
        kernal_size_postnet = 5
        number_conv_postnet = 5

    cfg = Config()
    B, T = 2, 24

    # Layer channel plan exactly as built in the PyTorch __init__
    # (rang = number_conv_postnet - 2; for _ in range(2, rang): ...):
    layer_dims = [(cfg.number_mel_channels, cfg.postnet_dim_emb)]
    rang = cfg.number_conv_postnet - 2
    for _ in range(2, rang):
        layer_dims.append((cfg.postnet_dim_emb, cfg.postnet_dim_emb))
    layer_dims.append((cfg.postnet_dim_emb, cfg.number_mel_channels))

    key = jax.random.PRNGKey(0)
    key, xkey = jax.random.split(key)
    x = jax.random.normal(xkey, (B, cfg.number_mel_channels, T), jnp.float32)

    layer_params = []
    for (c_in, c_out) in layer_dims:
        key, lkey = jax.random.split(key)
        layer_params.append(make_layer_params(lkey, c_in, c_out, cfg.kernal_size_postnet))

    # Fold/pack parameters ONCE (hoisted out of the forward path).
    packed = fold_and_pack_params(layer_params, cfg.kernal_size_postnet)

    out = jax.block_until_ready(
        postnet_forward(x, packed, n_mel=cfg.number_mel_channels,
                        ksize=cfg.kernal_size_postnet))
    ref = jax.block_until_ready(
        postnet_reference(x, layer_params, cfg.kernal_size_postnet))

    assert out.shape == (B, cfg.number_mel_channels, T), out.shape
    out_f32 = out.astype(jnp.float32)
    # bf16 matmul operands + bf16 activation scratch + bf16 output across 3
    # fused conv+BN layers vs. an f32 reference (accumulation/epilogue f32).
    max_err = float(jnp.max(jnp.abs(out_f32 - ref)))
    assert jnp.allclose(out_f32, ref, rtol=5e-2, atol=1e-1), max_err
    print("KERNEL_OK")
</pallas_src>

<mosaic_0001>
module attributes {stable_mosaic.version = 11 : i64} {
  func.func @_postnet_fused_kernel(%arg0: i32, %arg1: memref<1x24x128xbf16, #tpu.memory_space<vmem>>, %arg2: memref<640x128xbf16, #tpu.memory_space<vmem>>, %arg3: memref<1x128xf32, #tpu.memory_space<vmem>>, %arg4: memref<1x128xf32, #tpu.memory_space<vmem>>, %arg5: memref<640x128xbf16, #tpu.memory_space<vmem>>, %arg6: memref<1x128xf32, #tpu.memory_space<vmem>>, %arg7: memref<1x128xf32, #tpu.memory_space<vmem>>, %arg8: memref<640x128xbf16, #tpu.memory_space<vmem>>, %arg9: memref<1x128xf32, #tpu.memory_space<vmem>>, %arg10: memref<1x128xf32, #tpu.memory_space<vmem>>, %arg11: memref<1x24x128xbf16, #tpu.memory_space<vmem>>, %arg12: memref<28x128xbf16, #tpu.memory_space<vmem>>, %arg13: memref<28x128xbf16, #tpu.memory_space<vmem>>, %arg14: memref<28x128xbf16, #tpu.memory_space<vmem>>) attributes {dimension_semantics = [#tpu.dimension_semantics<parallel>], iteration_bounds = array<i64: 2>, scalar_prefetch = 0 : i64, scratch_operands = 3 : i64, tpu.core_type = #tpu.core_type<tc>, window_params = [{transform_indices = @transform_0, window_bounds = array<i64: 1, 24, 128>}, {pipeline_mode = #tpu.pipeline_mode<synchronous>, transform_indices = @transform_1, window_bounds = array<i64: 640, 128>}, {pipeline_mode = #tpu.pipeline_mode<synchronous>, transform_indices = @transform_2, window_bounds = array<i64: 1, 128>}, {pipeline_mode = #tpu.pipeline_mode<synchronous>, transform_indices = @transform_3, window_bounds = array<i64: 1, 128>}, {pipeline_mode = #tpu.pipeline_mode<synchronous>, transform_indices = @transform_4, window_bounds = array<i64: 640, 128>}, {pipeline_mode = #tpu.pipeline_mode<synchronous>, transform_indices = @transform_5, window_bounds = array<i64: 1, 128>}, {pipeline_mode = #tpu.pipeline_mode<synchronous>, transform_indices = @transform_6, window_bounds = array<i64: 1, 128>}, {pipeline_mode = #tpu.pipeline_mode<synchronous>, transform_indices = @transform_7, window_bounds = array<i64: 640, 128>}, {pipeline_mode = #tpu.pipeline_mode<synchronous>, transform_indices = @transform_8, window_bounds = array<i64: 1, 128>}, {pipeline_mode = #tpu.pipeline_mode<synchronous>, transform_indices = @transform_9, window_bounds = array<i64: 1, 128>}, {transform_indices = @transform_10, window_bounds = array<i64: 1, 24, 128>}]} {
    %cst = arith.constant 0.000000e+00 : bf16
    %0 = vector.broadcast %cst : bf16 to vector<2x128xbf16>
    %c0 = arith.constant 0 : index
    %c0_0 = arith.constant 0 : index
    %1 = vector.load %arg12[%c0, %c0_0] : memref<28x128xbf16, #tpu.memory_space<vmem>>, vector<2x128xbf16>
    tpu.vector_store %arg12[%c0, %c0_0], %0 {strides = array<i32>} : memref<28x128xbf16, #tpu.memory_space<vmem>>, vector<2x128xbf16>,
    %cst_1 = arith.constant 0.000000e+00 : bf16
    %2 = vector.broadcast %cst_1 : bf16 to vector<2x128xbf16>
    %c26 = arith.constant 26 : index
    %c0_2 = arith.constant 0 : index
    %3 = vector.load %arg12[%c26, %c0_2] : memref<28x128xbf16, #tpu.memory_space<vmem>>, vector<2x128xbf16>
    tpu.vector_store %arg12[%c26, %c0_2], %2 {strides = array<i32>} : memref<28x128xbf16, #tpu.memory_space<vmem>>, vector<2x128xbf16>,
    %cst_3 = arith.constant 0.000000e+00 : bf16
    %4 = vector.broadcast %cst_3 : bf16 to vector<2x128xbf16>
    %c0_4 = arith.constant 0 : index
    %c0_5 = arith.constant 0 : index
    %5 = vector.load %arg13[%c0_4, %c0_5] : memref<28x128xbf16, #tpu.memory_space<vmem>>, vector<2x128xbf16>
    tpu.vector_store %arg13[%c0_4, %c0_5], %4 {strides = array<i32>} : memref<28x128xbf16, #tpu.memory_space<vmem>>, vector<2x128xbf16>,
    %cst_6 = arith.constant 0.000000e+00 : bf16
    %6 = vector.broadcast %cst_6 : bf16 to vector<2x128xbf16>
    %c26_7 = arith.constant 26 : index
    %c0_8 = arith.constant 0 : index
    %7 = vector.load %arg13[%c26_7, %c0_8] : memref<28x128xbf16, #tpu.memory_space<vmem>>, vector<2x128xbf16>
    tpu.vector_store %arg13[%c26_7, %c0_8], %6 {strides = array<i32>} : memref<28x128xbf16, #tpu.memory_space<vmem>>, vector<2x128xbf16>,
    %cst_9 = arith.constant 0.000000e+00 : bf16
    %8 = vector.broadcast %cst_9 : bf16 to vector<2x128xbf16>
    %c0_10 = arith.constant 0 : index
    %c0_11 = arith.constant 0 : index
    %9 = vector.load %arg14[%c0_10, %c0_11] : memref<28x128xbf16, #tpu.memory_space<vmem>>, vector<2x128xbf16>
    tpu.vector_store %arg14[%c0_10, %c0_11], %8 {strides = array<i32>} : memref<28x128xbf16, #tpu.memory_space<vmem>>, vector<2x128xbf16>,
    %cst_12 = arith.constant 0.000000e+00 : bf16
    %10 = vector.broadcast %cst_12 : bf16 to vector<2x128xbf16>
    %c26_13 = arith.constant 26 : index
    %c0_14 = arith.constant 0 : index
    %11 = vector.load %arg14[%c26_13, %c0_14] : memref<28x128xbf16, #tpu.memory_space<vmem>>, vector<2x128xbf16>
    tpu.vector_store %arg14[%c26_13, %c0_14], %10 {strides = array<i32>} : memref<28x128xbf16, #tpu.memory_space<vmem>>, vector<2x128xbf16>,
    %c0_15 = arith.constant 0 : index
    %c0_16 = arith.constant 0 : index
    %c0_17 = arith.constant 0 : index
    %12 = vector.load %arg1[%c0_15, %c0_16, %c0_17] : memref<1x24x128xbf16, #tpu.memory_space<vmem>>, vector<1x24x128xbf16>
    %13 = vector.shape_cast %12 : vector<1x24x128xbf16> to vector<24x128xbf16>
    %c2 = arith.constant 2 : index
    %c0_18 = arith.constant 0 : index
    %14 = vector.load %arg12[%c2, %c0_18] : memref<28x128xbf16, #tpu.memory_space<vmem>>, vector<24x128xbf16>
    tpu.vector_store %arg12[%c2, %c0_18], %13 {strides = array<i32>} : memref<28x128xbf16, #tpu.memory_space<vmem>>, vector<24x128xbf16>,
    %c0_19 = arith.constant 0 : index
    %c0_20 = arith.constant 0 : index
    %15 = vector.load %arg12[%c0_19, %c0_20] : memref<28x128xbf16, #tpu.memory_space<vmem>>, vector<28x128xbf16>
    %16 = vector.extract_strided_slice %15 {offsets = [0, 0], sizes = [24, 128], strides = [1, 1]} : vector<28x128xbf16> to vector<24x128xbf16>
    %17 = vector.extract_strided_slice %15 {offsets = [1, 0], sizes = [24, 128], strides = [1, 1]} : vector<28x128xbf16> to vector<24x128xbf16>
    %18 = vector.extract_strided_slice %15 {offsets = [2, 0], sizes = [24, 128], strides = [1, 1]} : vector<28x128xbf16> to vector<24x128xbf16>
    %19 = vector.extract_strided_slice %15 {offsets = [3, 0], sizes = [24, 128], strides = [1, 1]} : vector<28x128xbf16> to vector<24x128xbf16>
    %20 = vector.extract_strided_slice %15 {offsets = [4, 0], sizes = [24, 128], strides = [1, 1]} : vector<28x128xbf16> to vector<24x128xbf16>
    %21 = tpu.concatenate %16, %17, %18, %19, %20 in 1 : vector<24x128xbf16>, vector<24x128xbf16>, vector<24x128xbf16>, vector<24x128xbf16>, vector<24x128xbf16> -> vector<24x640xbf16>
    %c0_21 = arith.constant 0 : index
    %c0_22 = arith.constant 0 : index
    %22 = vector.load %arg2[%c0_21, %c0_22] : memref<640x128xbf16, #tpu.memory_space<vmem>>, vector<640x128xbf16>
    %cst_23 = arith.constant dense<0.000000e+00> : vector<24x128xf32>
    %23 = tpu.matmul %21, %22, %cst_23 {dimension_numbers = #tpu.dot_dimension_numbers<[1], [0], [0], [1], [0, 0, 1, 1], [], []>} : vector<24x640xbf16>, vector<640x128xbf16>, vector<24x128xf32> -> vector<24x128xf32>
    %c0_24 = arith.constant 0 : index
    %c0_25 = arith.constant 0 : index
    %24 = vector.load %arg3[%c0_24, %c0_25] : memref<1x128xf32, #tpu.memory_space<vmem>>, vector<1x128xf32>
    %25 = vector.broadcast %24 : vector<1x128xf32> to vector<24x128xf32>
    %26 = arith.mulf %23, %25 : vector<24x128xf32>
    %c0_26 = arith.constant 0 : index
    %c0_27 = arith.constant 0 : index
    %27 = vector.load %arg4[%c0_26, %c0_27] : memref<1x128xf32, #tpu.memory_space<vmem>>, vector<1x128xf32>
    %28 = vector.broadcast %27 : vector<1x128xf32> to vector<24x128xf32>
    %29 = arith.addf %26, %28 : vector<24x128xf32>
    %30 = math.tanh %29 : vector<24x128xf32>
    %31 = arith.truncf %30 : vector<24x128xf32> to vector<24x128xbf16>
    %c2_28 = arith.constant 2 : index
    %c0_29 = arith.constant 0 : index
    %32 = vector.load %arg13[%c2_28, %c0_29] : memref<28x128xbf16, #tpu.memory_space<vmem>>, vector<24x128xbf16>
    tpu.vector_store %arg13[%c2_28, %c0_29], %31 {strides = array<i32>} : memref<28x128xbf16, #tpu.memory_space<vmem>>, vector<24x128xbf16>,
    %c0_30 = arith.constant 0 : index
    %c0_31 = arith.constant 0 : index
    %33 = vector.load %arg13[%c0_30, %c0_31] : memref<28x128xbf16, #tpu.memory_space<vmem>>, vector<28x128xbf16>
    %34 = vector.extract_strided_slice %33 {offsets = [0, 0], sizes = [24, 128], strides = [1, 1]} : vector<28x128xbf16> to vector<24x128xbf16>
    %35 = vector.extract_strided_slice %33 {offsets = [1, 0], sizes = [24, 128], strides = [1, 1]} : vector<28x128xbf16> to vector<24x128xbf16>
    %36 = vector.extract_strided_slice %33 {offsets = [2, 0], sizes = [24, 128], strides = [1, 1]} : vector<28x128xbf16> to vector<24x128xbf16>
    %37 = vector.extract_strided_slice %33 {offsets = [3, 0], sizes = [24, 128], strides = [1, 1]} : vector<28x128xbf16> to vector<24x128xbf16>
    %38 = vector.extract_strided_slice %33 {offsets = [4, 0], sizes = [24, 128], strides = [1, 1]} : vector<28x128xbf16> to vector<24x128xbf16>
    %39 = tpu.concatenate %34, %35, %36, %37, %38 in 1 : vector<24x128xbf16>, vector<24x128xbf16>, vector<24x128xbf16>, vector<24x128xbf16>, vector<24x128xbf16> -> vector<24x640xbf16>
    %c0_32 = arith.constant 0 : index
    %c0_33 = arith.constant 0 : index
    %40 = vector.load %arg5[%c0_32, %c0_33] : memref<640x128xbf16, #tpu.memory_space<vmem>>, vector<640x128xbf16>
    %cst_34 = arith.constant dense<0.000000e+00> : vector<24x128xf32>
    %41 = tpu.matmul %39, %40, %cst_34 {dimension_numbers = #tpu.dot_dimension_numbers<[1], [0], [0], [1], [0, 0, 1, 1], [], []>} : vector<24x640xbf16>, vector<640x128xbf16>, vector<24x128xf32> -> vector<24x128xf32>
    %c0_35 = arith.constant 0 : index
    %c0_36 = arith.constant 0 : index
    %42 = vector.load %arg6[%c0_35, %c0_36] : memref<1x128xf32, #tpu.memory_space<vmem>>, vector<1x128xf32>
    %43 = vector.broadcast %42 : vector<1x128xf32> to vector<24x128xf32>
    %44 = arith.mulf %41, %43 : vector<24x128xf32>
    %c0_37 = arith.constant 0 : index
    %c0_38 = arith.constant 0 : index
    %45 = vector.load %arg7[%c0_37, %c0_38] : memref<1x128xf32, #tpu.memory_space<vmem>>, vector<1x128xf32>
    %46 = vector.broadcast %45 : vector<1x128xf32> to vector<24x128xf32>
    %47 = arith.addf %44, %46 : vector<24x128xf32>
    %48 = math.tanh %47 : vector<24x128xf32>
    %49 = arith.truncf %48 : vector<24x128xf32> to vector<24x128xbf16>
    %c2_39 = arith.constant 2 : index
    %c0_40 = arith.constant 0 : index
    %50 = vector.load %arg14[%c2_39, %c0_40] : memref<28x128xbf16, #tpu.memory_space<vmem>>, vector<24x128xbf16>
    tpu.vector_store %arg14[%c2_39, %c0_40], %49 {strides = array<i32>} : memref<28x128xbf16, #tpu.memory_space<vmem>>, vector<24x128xbf16>,
    %c0_41 = arith.constant 0 : index
    %c0_42 = arith.constant 0 : index
    %51 = vector.load %arg14[%c0_41, %c0_42] : memref<28x128xbf16, #tpu.memory_space<vmem>>, vector<28x128xbf16>
    %52 = vector.extract_strided_slice %51 {offsets = [0, 0], sizes = [24, 128], strides = [1, 1]} : vector<28x128xbf16> to vector<24x128xbf16>
    %53 = vector.extract_strided_slice %51 {offsets = [1, 0], sizes = [24, 128], strides = [1, 1]} : vector<28x128xbf16> to vector<24x128xbf16>
    %54 = vector.extract_strided_slice %51 {offsets = [2, 0], sizes = [24, 128], strides = [1, 1]} : vector<28x128xbf16> to vector<24x128xbf16>
    %55 = vector.extract_strided_slice %51 {offsets = [3, 0], sizes = [24, 128], strides = [1, 1]} : vector<28x128xbf16> to vector<24x128xbf16>
    %56 = vector.extract_strided_slice %51 {offsets = [4, 0], sizes = [24, 128], strides = [1, 1]} : vector<28x128xbf16> to vector<24x128xbf16>
    %57 = tpu.concatenate %52, %53, %54, %55, %56 in 1 : vector<24x128xbf16>, vector<24x128xbf16>, vector<24x128xbf16>, vector<24x128xbf16>, vector<24x128xbf16> -> vector<24x640xbf16>
    %c0_43 = arith.constant 0 : index
    %c0_44 = arith.constant 0 : index
    %58 = vector.load %arg8[%c0_43, %c0_44] : memref<640x128xbf16, #tpu.memory_space<vmem>>, vector<640x128xbf16>
    %cst_45 = arith.constant dense<0.000000e+00> : vector<24x128xf32>
    %59 = tpu.matmul %57, %58, %cst_45 {dimension_numbers = #tpu.dot_dimension_numbers<[1], [0], [0], [1], [0, 0, 1, 1], [], []>} : vector<24x640xbf16>, vector<640x128xbf16>, vector<24x128xf32> -> vector<24x128xf32>
    %c0_46 = arith.constant 0 : index
    %c0_47 = arith.constant 0 : index
    %60 = vector.load %arg9[%c0_46, %c0_47] : memref<1x128xf32, #tpu.memory_space<vmem>>, vector<1x128xf32>
    %61 = vector.broadcast %60 : vector<1x128xf32> to vector<24x128xf32>
    %62 = arith.mulf %59, %61 : vector<24x128xf32>
    %c0_48 = arith.constant 0 : index
    %c0_49 = arith.constant 0 : index
    %63 = vector.load %arg10[%c0_48, %c0_49] : memref<1x128xf32, #tpu.memory_space<vmem>>, vector<1x128xf32>
    %64 = vector.broadcast %63 : vector<1x128xf32> to vector<24x128xf32>
    %65 = arith.addf %62, %64 : vector<24x128xf32>
    %66 = arith.truncf %65 : vector<24x128xf32> to vector<24x128xbf16>
    %c0_50 = arith.constant 0 : index
    %c0_51 = arith.constant 0 : index
    %c0_52 = arith.constant 0 : index
    %67 = vector.load %arg11[%c0_50, %c0_51, %c0_52] : memref<1x24x128xbf16, #tpu.memory_space<vmem>>, vector<1x24x128xbf16>
    %68 = vector.shape_cast %67 : vector<1x24x128xbf16> to vector<24x128xbf16>
    %69 = vector.shape_cast %66 : vector<24x128xbf16> to vector<1x24x128xbf16>
    tpu.vector_store %arg11[%c0_50, %c0_51, %c0_52], %69 {strides = array<i32>} : memref<1x24x128xbf16, #tpu.memory_space<vmem>>, vector<1x24x128xbf16>,
    return
  }
  func.func @transform_0(%arg0: i32) -> (i32, i32, i32) {
    %c0_i32 = arith.constant 0 : i32
    %c0_i32_0 = arith.constant 0 : i32
    %c0_i32_1 = arith.constant 0 : i32
    return %arg0, %c0_i32, %c0_i32_0 : i32, i32, i32
  }
  func.func @transform_1(%arg0: i32) -> (i32, i32) {
    %c0_i32 = arith.constant 0 : i32
    %c0_i32_0 = arith.constant 0 : i32
    %c0_i32_1 = arith.constant 0 : i32
    return %c0_i32, %c0_i32_0 : i32, i32
  }
  func.func @transform_2(%arg0: i32) -> (i32, i32) {
    %c0_i32 = arith.constant 0 : i32
    %c0_i32_0 = arith.constant 0 : i32
    %c0_i32_1 = arith.constant 0 : i32
    return %c0_i32, %c0_i32_0 : i32, i32
  }
  func.func @transform_3(%arg0: i32) -> (i32, i32) {
    %c0_i32 = arith.constant 0 : i32
    %c0_i32_0 = arith.constant 0 : i32
    %c0_i32_1 = arith.constant 0 : i32
    return %c0_i32, %c0_i32_0 : i32, i32
  }
  func.func @transform_4(%arg0: i32) -> (i32, i32) {
    %c0_i32 = arith.constant 0 : i32
    %c0_i32_0 = arith.constant 0 : i32
    %c0_i32_1 = arith.constant 0 : i32
    return %c0_i32, %c0_i32_0 : i32, i32
  }
  func.func @transform_5(%arg0: i32) -> (i32, i32) {
    %c0_i32 = arith.constant 0 : i32
    %c0_i32_0 = arith.constant 0 : i32
    %c0_i32_1 = arith.constant 0 : i32
    return %c0_i32, %c0_i32_0 : i32, i32
  }
  func.func @transform_6(%arg0: i32) -> (i32, i32) {
    %c0_i32 = arith.constant 0 : i32
    %c0_i32_0 = arith.constant 0 : i32
    %c0_i32_1 = arith.constant 0 : i32
    return %c0_i32, %c0_i32_0 : i32, i32
  }
  func.func @transform_7(%arg0: i32) -> (i32, i32) {
    %c0_i32 = arith.constant 0 : i32
    %c0_i32_0 = arith.constant 0 : i32
    %c0_i32_1 = arith.constant 0 : i32
    return %c0_i32, %c0_i32_0 : i32, i32
  }
  func.func @transform_8(%arg0: i32) -> (i32, i32) {
    %c0_i32 = arith.constant 0 : i32
    %c0_i32_0 = arith.constant 0 : i32
    %c0_i32_1 = arith.constant 0 : i32
    return %c0_i32, %c0_i32_0 : i32, i32
  }
  func.func @transform_9(%arg0: i32) -> (i32, i32) {
    %c0_i32 = arith.constant 0 : i32
    %c0_i32_0 = arith.constant 0 : i32
    %c0_i32_1 = arith.constant 0 : i32
    return %c0_i32, %c0_i32_0 : i32, i32
  }
  func.func @transform_10(%arg0: i32) -> (i32, i32, i32) {
    %c0_i32 = arith.constant 0 : i32
    %c0_i32_0 = arith.constant 0 : i32
    %c0_i32_1 = arith.constant 0 : i32
    return %arg0, %c0_i32, %c0_i32_0 : i32, i32, i32
  }
}

</mosaic_0001>

<bundles_post_ra>
// kernel: tpu_custom_call.1
= control target key start
LH: loop header
LB: loop body
LE: loop exit
PB: predicated region body
PF: predicated region fallthrough
CT: control target
= control target key end

     0   :  { %s3505_s0 = inlined_call_operand.hbm [shape: bf16[2,24,128], index: 0, kind: input, shape index: {}]   ;;  %s3506_s1 = inlined_call_operand.hbm [shape: bf16[640,128], index: 1, kind: input, shape index: {}]   ;;  %s3507_s2 = inlined_call_operand.vmem [shape: f32[1,128], index: 2, kind: input, shape index: {}]   ;;  %s3508_s3 = inlined_call_operand.vmem [shape: f32[1,128], index: 3, kind: input, shape index: {}]   ;;  %s3509_s4 = inlined_call_operand.hbm [shape: bf16[640,128], index: 4, kind: input, shape index: {}]   ;;  %s3510_s5 = inlined_call_operand.vmem [shape: f32[1,128], index: 5, kind: input, shape index: {}]   ;;  %s3511_s6 = inlined_call_operand.vmem [shape: f32[1,128], index: 6, kind: input, shape index: {}]   ;;  %s3512_s7 = inlined_call_operand.hbm [shape: bf16[640,128], index: 7, kind: input, shape index: {}]   ;;  %s3513_s8 = inlined_call_operand.vmem [shape: f32[1,128], index: 8, kind: input, shape index: {}]   ;;  %s3514_s9 = inlined_call_operand.vmem [shape: f32[1,128], index: 9, kind: input, shape index: {}]   ;;  %s3515_s10 = inlined_call_operand.hbm [shape: bf16[2,24,128], index: 10, kind: output, shape index: {}]  }
   0x1   :  { %3524 = sst [smem:[#allocation20_spill]] %s3514_s9 }
   0x2   :  { %3525 = sst [smem:[#allocation21_spill]] %s3515_s10 }
   0x3   :  { %15 = vsyncpa [#allocation6], 0 }
   0x4   :  { %17 = vsyncpa [#allocation6 + $0x1], 0 }
   0x5   :  { %18 = vsyncpa [#allocation9], 0 }
   0x6   :  { %19 = vsyncpa [#allocation12], 0 }
   0x7   :  { %20 = vsyncpa [#allocation7], 0 }
   0x8   :  { %22 = vsyncpa [#allocation7 + $0x1], 0  ;;  %s3171_s13 = smov 0   ;;  %s3173_s14 = smov 0  }
   0x9   :  { %s3175_s15 = smov 0   ;;  %s3177_s16 = smov 0  }
   0xa LB: > { %3526 = sst [smem:[#allocation18_spill]] %s3092_s13  ;;  %s3192_s17 = sadd.s32 4294967295, %s3104_s16   ;;  %s3104_s16 = sphi %s3177_s16, %s3556_s16   ;;  %s3100_s15 = sphi %s3175_s15, %s3555_s15   ;;  %s3096_s14 = sphi %s3173_s14, %s3554_s14   ;;  %s3092_s13 = sphi %s3171_s13, %s3553_s13  }
   0xb   : > { %s2259_s18 = sadd.s32 4294967294, %s3104_s16   ;;  %p48_p0 = scmp.ne.s32.totalorder %s3096_s14, %s3092_s13 }
   0xc   : > { %p3516_p1 = scmp.eq.s32.totalorder %s3192_s17, 0  ;;  %p267_p3 = scmp.eq.s32.totalorder %s2259_s18, 1 }
   0xd   : > { %p2260_p5 = scmp.ge.s32.totalorder %s3104_s16, 1  ;;  %p274_p7 = scmp.lt.s32.totalorder %s3104_s16, 3 }
   0xe   : > { %p3201_p4 = por %p3516_p1, %p48_p0  ;;  %p3206_p6 = por %p267_p3, %p48_p0 }
   0xf   : > { %p3211_p8 = pnand %p2260_p5, %p274_p7  ;;  %s3106_s22 = smov [#allocation8]  }
  0x10   : > { %s3527_s19 = scalar_select %p3201_p4, 1, 0 }
  0x11   : > { %s3528_s20 = scalar_select %p3206_p6, 1, 0 }
  0x12   : > { %s3530_s21 = scalar_select %p3211_p8, 1, 0 }
  0x13   : > { %3529 = sst [smem:[#allocation19_spill]] %s3528_s20  ;;  %s286_s23 = sshll.u32 %s3106_s22, 4  ;;  %s3215_s23 = int_to_ptr.vmem [resolvable:$true] %s286_s23 }
  0x14   : > { %p2709_p9 = pneg %p3211_p8  ;;  %s3107_s25 = smov [#allocation10]  }
  0x15   : > { %s305_s26 = sshll.u32 %s3107_s25, 4  ;;  %s3108_s27 = smov [#allocation11]   ;;  %s3226_s26 = int_to_ptr.vmem [resolvable:$true] %s305_s26 }
  0x16   : > { %p3222_p11 = pnand %p2709_p9, %p3516_p1  ;;  %s3228_s28 = sshll.u32 %s3108_s27, 4  ;;  %s325_s28 = int_to_ptr.vmem [resolvable:$true] %s3228_s28 }
  0x17   : > { %s2916_s11 = scalar_lea.hbm %s3506_s1, 5120 }
  0x18   : > { %p2917_p12 = scmp.ne.s32.totalorder %s3506_s1, %s2916_s11  ;;  %p3238_p13 = pneg %p3222_p11 }
  0x19   : > { %p2923_p5 = scmp.lt.u32.totalorder %s2916_s11, %s3506_s1 }
  0x1a   : > { %p2919_p0 = pnand %p3238_p13, %p2917_p12 }
  0x1c   : > { %p2920_p3 = pneg %p2919_p0 }
  0x1e   : > { %p2925_p7 = pnand %p2923_p5, %p2920_p3 }
  0x20   : > { %2928 = shalt.err (!%p2925_p7)
}
  0x21   : > { %s2929_s29 = scalar_lea.vmem %s3215_s23, 5120  ;;  %p2937_p2 = scmp.lt.s32.totalorder %s3215_s23, %s3215_s23 }
  0x22   : > { %p2930_p9 = scmp.ne.s32.totalorder %s3215_s23, %s2929_s29  ;;  %p2938_p6 = scmp.lt.s32.totalorder %s2929_s29, %s2929_s29 }
  0x24   : > { %p2932_p10 = pnand %p2930_p9, %p3238_p13  ;;  %p2939_p12 = por %p2938_p6, %p2937_p2 }
  0x26   : > { %p2933_p1 = pneg %p2932_p10 }
  0x28   : > { %p2940_p0 = pnand %p2939_p12, %p2933_p1 }
  0x2a   : > { %2943 = shalt.err (!%p2940_p0)
}
  0x2b   : > { %s3522_s30 = smov 64   ;;  %s3523_s11 = smov 4  }
  0x2c   : > { %2712 = dma.hbm_to_vmem [thread:$0]  (!%p3222_p11), %s3506_s1, 5120, %s3215_s23, [#allocation9], %s3522_s30, %s3522_s30, %s3523_s11  }
  0x2d   : > { %s2944_s29 = scalar_lea.hbm %s3509_s4, 5120 }
  0x2e   : > { %p2945_p1 = scmp.ne.s32.totalorder %s3509_s4, %s2944_s29  ;;  %p2951_p10 = scmp.lt.u32.totalorder %s2944_s29, %s3509_s4 }
  0x30   : > { %p2947_p2 = pnand %p2945_p1, %p3238_p13 }
  0x32   : > { %p2948_p6 = pneg %p2947_p2 }
  0x34   : > { %p2953_p3 = pnand %p2951_p10, %p2948_p6 }
  0x36   : > { %2956 = shalt.err (!%p2953_p3)
}
  0x37   : > { %s2957_s23 = scalar_lea.vmem %s3226_s26, 5120  ;;  %p2965_p12 = scmp.lt.s32.totalorder %s3226_s26, %s3226_s26 }
  0x38   : > { %p2958_p5 = scmp.ne.s32.totalorder %s3226_s26, %s2957_s23  ;;  %p2966_p0 = scmp.lt.s32.totalorder %s2957_s23, %s2957_s23 }
  0x3a   : > { %p2960_p7 = pnand %p2958_p5, %p3238_p13  ;;  %p2967_p1 = por %p2966_p0, %p2965_p12 }
  0x3c   : > { %p2961_p9 = pneg %p2960_p7 }
  0x3e   : > { %p2968_p2 = pnand %p2967_p1, %p2961_p9 }
  0x40   : > { %2971 = shalt.err (!%p2968_p2)
}
  0x41   : > { %2715 = dma.hbm_to_vmem [thread:$0]  (!%p3222_p11), %s3509_s4, 5120, %s3226_s26, [#allocation9], %s3522_s30, %s3522_s30, %s3523_s11  }
  0x42   : > { %s2972_s12 = scalar_lea.hbm %s3512_s7, 5120 }
  0x43   : > { %p2973_p6 = scmp.ne.s32.totalorder %s3512_s7, %s2972_s12  ;;  %p2979_p5 = scmp.lt.u32.totalorder %s2972_s12, %s3512_s7 }
  0x45   : > { %p2975_p10 = pnand %p2973_p6, %p3238_p13 }
  0x47   : > { %p2976_p3 = pneg %p2975_p10 }
  0x49   : > { %p2981_p7 = pnand %p2979_p5, %p2976_p3 }
  0x4b   : > { %2984 = shalt.err (!%p2981_p7)
}
  0x4c   : > { %s2985_s23 = scalar_lea.vmem %s325_s28, 5120  ;;  %p2993_p1 = scmp.lt.s32.totalorder %s325_s28, %s325_s28 }
  0x4d   : > { %p2986_p9 = scmp.ne.s32.totalorder %s325_s28, %s2985_s23  ;;  %p2994_p2 = scmp.lt.s32.totalorder %s2985_s23, %s2985_s23 }
  0x4f   : > { %p2988_p12 = pnand %p2986_p9, %p3238_p13  ;;  %p2995_p4 = por %p2994_p2, %p2993_p1 }
  0x51   : > { %p2989_p0 = pneg %p2988_p12 }
  0x53   : > { %p2996_p8 = pnand %p2995_p4, %p2989_p0 }
  0x55   : > { %2999 = shalt.err (!%p2996_p8)
}
  0x56   : > { %2718 = dma.hbm_to_vmem [thread:$0]  (!%p3222_p11), %s3512_s7, 5120, %s325_s28, [#allocation12], %s3522_s30, %s3522_s30, %s3523_s11  }
  0x57   : > { %s3311_s22 = sadd.s32 1, %s3104_s16   ;;  %s35_s10 = sadd.s32 1, %s3100_s15 }
  0x58   : > { %s32_s24 = ssub.s32 %s3104_s16, %s3311_s22  ;;  %p42_p8 = scmp.ne.s32.totalorder %s3100_s15, %s3096_s14 }
  0x59   : > { %p33_p4 = scmp.eq.s32.totalorder %s32_s24, 0  ;;  %p43_p13 = scmp.eq.s32.totalorder %s3104_s16, 0 }
  0x5a   : > { %p2730_p6 = scmp.lt.s32.totalorder %s3104_s16, 2  ;;  %p3533_p3 = scmp.eq.s32.totalorder %s3192_s17, 1 }
  0x5b   : > { %s3321_s13 = scalar_select %p33_p4, %s3100_s15, %s35_s10  }
  0x5c   : > { %p44_p10 = por %p43_p13, %p42_p8  ;;  %p3325_p5 = por %p3533_p3, %p42_p8 }
  0x5d   : > { %s344_s12 = sand.u32 1, %s3100_s15   ;;  %s2690_s18 = smul.u32 192, %s3104_s16 }
  0x5e   : > { %s2689_s28 = smul.u32 12, %s344_s12  ;;  %p3331_p11 = pnand %p2730_p6, %p44_p10 }
  0x5f   : > { %s3338_s23 = scalar_lea.hbm %s3505_s0, %s2690_s18  ;;  %s3342_s24 = scalar_lea.sflag [#allocation6], %s344_s12 }
  0x60   : > { %s348_s26 = scalar_lea.vmem [#allocation5], %s2689_s28  ;;  %s3000_s10 = scalar_lea.hbm %s3338_s23, 192 }
  0x61   : > { %s355_s9 = sshll.u32 %s348_s26, 4  ;;  %p3001_p7 = scmp.ne.s32.totalorder %s3338_s23, %s3000_s10  ;;  %s3340_s9 = int_to_ptr.vmem [resolvable:$true] %s355_s9 }
  0x62   : > { %p3002_p9 = pneg %p3331_p11  ;;  %s3005_s29 = scalar_lea.hbm %s3505_s0, 384 }
  0x63   : > { %p3006_p1 = scmp.lt.u32.totalorder %s3338_s23, %s3505_s0  ;;  %p3007_p2 = scmp.lt.u32.totalorder %s3005_s29, %s3000_s10 }
  0x64   : > { %p3003_p12 = pnand %p3002_p9, %p3001_p7  ;;  %p3009_p8 = scmp.lt.u32.totalorder %s3000_s10, %s3338_s23 }
  0x65   : > { %p3008_p4 = por %p3007_p2, %p3006_p1 }
  0x66   : > { %p3004_p0 = pneg %p3003_p12 }
  0x67   : > { %p3010_p13 = por %p3009_p8, %p3008_p4 }
  0x69   : > { %p3011_p6 = pnand %p3010_p13, %p3004_p0 }
  0x6b   : > { %3014 = shalt.err (!%p3011_p6)
}
  0x6c   : > { %s3015_s12 = scalar_lea.vmem %s3340_s9, 192  ;;  %s3111_s28 = smov [#allocation5]  }
  0x6d   : > { %p3016_p10 = scmp.ne.s32.totalorder %s3340_s9, %s3015_s12  ;;  %s3020_s26 = sshll.u32 %s3111_s28, 4  ;;  %s3021_s26 = int_to_ptr.vmem [resolvable:$false] %s3020_s26 }
  0x6e   : > { %s3022_s30 = scalar_lea.vmem %s3021_s26, 384  ;;  %p3023_p12 = scmp.lt.s32.totalorder %s3340_s9, %s3021_s26 }
  0x6f   : > { %p3018_p3 = pnand %p3016_p10, %p3002_p9  ;;  %p3024_p1 = scmp.lt.s32.totalorder %s3022_s30, %s3015_s12 }
  0x71   : > { %p3019_p7 = pneg %p3018_p3  ;;  %p3025_p2 = por %p3024_p1, %p3023_p12 }
  0x73   : > { %p3026_p4 = pnand %p3025_p2, %p3019_p7 }
  0x75   : > { %3029 = shalt.err (!%p3026_p4)
}
  0x76   : > { %s3536_s11 = smov 4   ;;  %s3537_s10 = smov 64  }
  0x77   : > { %2722 = dma.hbm_to_vmem [thread:$0]  (!%p3331_p11), %s3338_s23, 192, %s3340_s9, %s3342_s24, %s3537_s10, %s3537_s10, %s3536_s11  }
  0x78   : > { %p3538_p9 = scmp.ne.s32.totalorder %s3530_s21, 0 }
  0x79   : > { %s3376_s18 = sand.u32 (!%p3538_p9), 1, %s3096_s14   ;;  %p3539_p0 = scmp.ne.s32.totalorder (!%p3538_p9), %s3527_s19, 0 }
  0x7a   : > { %367 = sbr.rel (%p3538_p9) target bundleno = 1015 (0x3f7), region = 60  ;;  %s370_s29 = scalar_lea.sflag (!%p3538_p9), [#allocation6], %s3376_s18 }
  0x7b   : > { %s2691_s27 = smul.u32 (!%p3538_p9), 12, %s3376_s18 }
  0x7d   : > { %s3382_s25 = scalar_lea.vmem (!%p3538_p9), [#allocation5], %s2691_s27 }
  0x81   : > { %3075 = dma.done.wait (%p3539_p0), %s370_s29, 192  }
  0x82   : > { %3077 = vsyncadd (%p3539_p0), %s370_s29, 4294967104  ;;  %p3540_p11 = scmp.eq.s32.totalorder %s3192_s17, 0 }
  0x84   : > { %3079 = dma.done.wait (%p3540_p11), [#allocation9], 10240   ;;  %p3541_p8 = pmov %p3540_p11 }
  0x86   : > { %3081 = vsyncadd (%p3541_p8), [#allocation9], 4294957056  ;;  %p3542_p13 = pmov %p3541_p8 }
  0x87   : > { %p3543_p6 = pmov %p3541_p8 }
  0x88   : > { %3083 = dma.done.wait (%p3542_p13), [#allocation12], 5120  }
  0x89   : > { %3085 = vsyncadd (%p3543_p6), [#allocation12], 4294962176  ;;  %v3112_v0 = vmov 0   ;;  %v2775_v1 = vld [vmem:[#allocation8 + $0x40] sm:$0xff]   ;;  %v2779_v5 = vld [vmem:[#allocation8 + $0x48] sm:$0xff]   ;;  %vm435_vm0 = vcmask 1040384  }
  0x8a   : > { %423 = vst [vmem:[#allocation2] sm:$0x1] %v3112_v0  ;;  %424 = vst [vmem:[#allocation2 + $0xc] sm:$0x2] %v3112_v0  ;;  %v2776_v2 = vld [vmem:[#allocation8 + $0xc0] sm:$0xff]   ;;  %2431 = vmatprep.subr.bf16.mxu0 %v2775_v1  ;;  %v2780_v6 = vld [vmem:[#allocation8 + $0xc8] sm:$0xff]  }
  0x8b   : > { %425 = vst [vmem:[#allocation3] sm:$0x1] %v3112_v0  ;;  %426 = vst [vmem:[#allocation3 + $0xc] sm:$0x2] %v3112_v0  ;;  %v2777_v3 = vld [vmem:[#allocation8] sm:$0xff]   ;;  %2459 = vmatprep.subr.bf16.mxu1 %v2776_v2  ;;  %v2781_v7 = vld [vmem:[#allocation8 + $0x8] sm:$0xff]  }
  0x8c   : > { %427 = vst [vmem:[#allocation4] sm:$0x1] %v3112_v0  ;;  %428 = vst [vmem:[#allocation4 + $0xc] sm:$0x2] %v3112_v0  ;;  %v2778_v4 = vld [vmem:[#allocation8 + $0x80] sm:$0xff]   ;;  %2432 = vmatpush3.bf16.msra.mxu0 %v2777_v3  ;;  %v2782_v8 = vld [vmem:[#allocation8 + $0x88] sm:$0xff]  }
  0x8d   : > { %2460 = vmatpush3.bf16.msra.mxu1 %v2778_v4  ;;  %2433 = vmatprep.subr.bf16.mxu0 %v2779_v5  ;;  %v2783_v9 = vld [vmem:[#allocation8 + $0x50] sm:$0xff]   ;;  %v2787_v13 = vld [vmem:[#allocation8 + $0x58] sm:$0xff]   ;;  %v2791_v17 = vld [vmem:[#allocation8 + $0x60] sm:$0xff]   ;;  %vm436_vm1 = vcmask 1044484   ;;  %vm471_vm3 = vsmask.f32 7424 }
  0x8e   : > { %2461 = vmatprep.subr.bf16.mxu1 %v2780_v6  ;;  %v2784_v10 = vld [vmem:[#allocation8 + $0xd0] sm:$0xff]   ;;  %v2788_v14 = vld [vmem:[#allocation8 + $0xd8] sm:$0xff]   ;;  %v2792_v18 = vld [vmem:[#allocation8 + $0xe0] sm:$0xff]   ;;  %vm489_vm4 = vcmask 1046528   ;;  %vm495_vm5 = vsmask.f32 6400 }
  0x8f   : > { %v2785_v11 = vld [vmem:[#allocation8 + $0x10] sm:$0xff]   ;;  %v2789_v15 = vld [vmem:[#allocation8 + $0x18] sm:$0xff]   ;;  %v2793_v19 = vld [vmem:[#allocation8 + $0x20] sm:$0xff]   ;;  %vm505_vm6 = vcmask 1045504   ;;  %s421_s19 = scalar_lea.vmem [#allocation13], %s2691_s27  ;;  %s2692_s23 = smul.u32 192, %s3192_s17 }
  0x90   : > { %2434 = vmatpush3.bf16.msra.mxu0 %v2781_v7  ;;  %v2786_v12 = vld [vmem:[#allocation8 + $0x90] sm:$0xff]   ;;  %v2790_v16 = vld [vmem:[#allocation8 + $0x98] sm:$0xff]   ;;  %v2794_v20 = vld [vmem:[#allocation8 + $0xa0] sm:$0xff]   ;;  %s2157_s21 = sshll.u32 %s421_s19, 4  ;;  %s3547_s12 = sld [smem:[#allocation21_spill]]  ;;  %s3456_s21 = int_to_ptr.vmem [resolvable:$true] %s2157_s21 }
  0x91   : > { %2462 = vmatpush3.bf16.msra.mxu1 %v2782_v8  ;;  %2435 = vmatprep.subr.bf16.mxu0 %v2783_v9  ;;  %v2795_v21 = vld [vmem:[#allocation8 + $0x68] sm:$0xff]   ;;  %v2799_v25 = vld [vmem:[#allocation8 + $0x70] sm:$0xff]   ;;  %v2803_v29 = vld [vmem:[#allocation8 + $0x78] sm:$0xff]   ;;  %s2144_s27 = scalar_lea.sflag [#allocation7], %s3376_s18  ;;  %s3030_s26 = scalar_lea.vmem %s3456_s21, 192 }
  0x92   : > { %2463 = vmatprep.subr.bf16.mxu1 %v2784_v10  ;;  %v2796_v22 = vld [vmem:[#allocation8 + $0xe8] sm:$0xff]   ;;  %v2800_v26 = vld [vmem:[#allocation8 + $0xf0] sm:$0xff]   ;;  %v2804_v30 = vld [vmem:[#allocation8 + $0xf8] sm:$0xff]   ;;  %p3031_p10 = scmp.ne.s32.totalorder %s3456_s21, %s3030_s26  ;;  %s3113_s17 = smov [#allocation13]  }
  0x93   : > { %v2797_v23 = vld [vmem:[#allocation8 + $0x28] sm:$0xff]   ;;  %v2801_v27 = vld [vmem:[#allocation8 + $0x30] sm:$0xff]   ;;  %v2805_v31 = vld [vmem:[#allocation8 + $0x38] sm:$0xff]   ;;  %s3034_s30 = sshll.u32 %s3113_s17, 4  ;;  %s3035_s30 = int_to_ptr.vmem [resolvable:$false] %s3034_s30 }
  0x94   : > { %2436 = vmatpush3.bf16.msra.mxu0 %v2785_v11  ;;  %v2798_v24 = vld [vmem:[#allocation8 + $0xa8] sm:$0xff]   ;;  %v2802_v28 = vld [vmem:[#allocation8 + $0xb0] sm:$0xff]   ;;  %v2806_v32 = vld [vmem:[#allocation8 + $0xb8] sm:$0xff]   ;;  %p3032_p3 = pnand %p3031_p10, %p3325_p5  ;;  %s3036_s11 = scalar_lea.vmem %s3035_s30, 384 }
  0x95   : > { %2464 = vmatpush3.bf16.msra.mxu1 %v2786_v12  ;;  %2437 = vmatprep.subr.bf16.mxu0 %v2787_v13  ;;  %v429_v33 = vld [vmem:[%s3382_s25] sm:$0xf]  ;;  %v430_v34 = vld [vmem:[%s3382_s25 + $0x4] sm:$0xf]  ;;  %v431_v35 = vld [vmem:[%s3382_s25 + $0x8] sm:$0xf]  ;;  %p3037_p12 = scmp.lt.s32.totalorder %s3456_s21, %s3035_s30  ;;  %p3038_p1 = scmp.lt.s32.totalorder %s3036_s11, %s3030_s26 }
  0x96   : > { %2465 = vmatprep.subr.bf16.mxu1 %v2788_v14  ;;  %vm3399_vm2 = vmor %vm435_vm0, %vm436_vm1  ;;  %v438_v37 = vrot.slane %v429_v33, 7  ;;  %v440_v38 = vrot.slane %v430_v34, 7  ;;  %v443_v39 = vrot.slane %v431_v35, 7  ;;  %v2809_v40 = vld [vmem:[#allocation8 + $0x100] sm:$0xff]   ;;  %v2810_v2 = vld [vmem:[#allocation8 + $0x108] sm:$0xff]   ;;  %s3546_s25 = sld [smem:[#allocation20_spill]]  ;;  %s3461_s28 = scalar_lea.hbm %s3547_s12, %s2692_s23 }
  0x97   : > { %v2811_v8 = vld [vmem:[#allocation8 + $0x110] sm:$0xff]   ;;  %v2812_v9 = vld [vmem:[#allocation8 + $0x118] sm:$0xff]   ;;  %v2813_v12 = vld [vmem:[#allocation8 + $0x120] sm:$0xff]   ;;  %p3033_p7 = pneg %p3032_p3  ;;  %p3039_p2 = por %p3038_p1, %p3037_p12 }
  0x98   : > { %2438 = vmatpush3.bf16.msra.mxu0 %v2789_v15  ;;  %v439_v41 = vrot.slane %v438_v37, 4  ;;  %v442_v42 = vrot.slane %v440_v38, 4  ;;  %v445_v43 = vrot.slane %v443_v39, 4  ;;  %450 = vst [vmem:[#allocation2] sm:$0xe] %v438_v37  ;;  %v2814_v13 = vld [vmem:[#allocation8 + $0x128] sm:$0xff]  }
  0x99   : > { %2466 = vmatpush3.bf16.msra.mxu1 %v2790_v16  ;;  %2439 = vmatprep.subr.bf16.mxu0 %v2791_v17  ;;  %v2816_v14 = vld [vmem:[#allocation8 + $0x130] sm:$0xff]   ;;  %v2817_v15 = vld [vmem:[#allocation8 + $0x138] sm:$0xff]   ;;  %v2818_v16 = vld [vmem:[#allocation10 + $0x40] sm:$0xff]   ;;  %p3040_p4 = pnand %p3039_p2, %p3033_p7 }
  0x9a   : > { %2467 = vmatprep.subr.bf16.mxu1 %v2792_v18  ;;  %v441_v44 = vsel %vm3399_vm2, %v439_v41, %v440_v38  ;;  %v444_v45 = vsel %vm3399_vm2, %v442_v42, %v443_v39  ;;  %453 = vst [vmem:[#allocation2 + $0xc] sm:$0x1] %v445_v43  ;;  %v2819_v17 = vld [vmem:[#allocation10] sm:$0xff]   ;;  %v2837_v35 = vld [vmem:[#allocation10 + $0x68] sm:$0xff]   ;;  %v2843_v42 = vld [vmem:[#allocation10 + $0x30] sm:$0xff]  }
  0x9b   : > { %451 = vst [vmem:[#allocation2 + $0x4] sm:$0xf] %v441_v44  ;;  %452 = vst [vmem:[#allocation2 + $0x8] sm:$0xf] %v444_v45  ;;  %v2820_v18 = vld [vmem:[#allocation10 + $0xc0] sm:$0xff]   ;;  %v2839_v38 = vld [vmem:[#allocation10 + $0x28] sm:$0xff]  }
  0x9c   : > { %2440 = vmatpush3.bf16.msra.mxu0 %v2793_v19  ;;  %v2821_v19 = vld [vmem:[#allocation10 + $0x48] sm:$0xff]   ;;  %v2835_v33 = vld [vmem:[#allocation10 + $0x20] sm:$0xff]   ;;  %v2844_v43 = vld [vmem:[#allocation10 + $0xf0] sm:$0xff]  }
  0x9d   : > { %2468 = vmatpush3.bf16.msra.mxu1 %v2794_v20  ;;  %2441 = vmatprep.subr.bf16.mxu0 %v2795_v21  ;;  %v2822_v20 = vld [vmem:[#allocation10 + $0x80] sm:$0xff]   ;;  %v2823_v21 = vld [vmem:[#allocation10 + $0x8] sm:$0xff]   ;;  %v2845_v44 = vld [vmem:[#allocation10 + $0x78] sm:$0xff]  }
  0x9e   : > { %2469 = vmatprep.subr.bf16.mxu1 %v2796_v22  ;;  %v2824_v22 = vld [vmem:[#allocation10 + $0xc8] sm:$0xff]   ;;  %v2836_v34 = vld [vmem:[#allocation10 + $0xe0] sm:$0xff]   ;;  %v2846_v45 = vld [vmem:[#allocation10 + $0xb0] sm:$0xff]  }
  0x9f   : > { %v2838_v37 = vld [vmem:[#allocation10 + $0xa0] sm:$0xff]   ;;  %v2840_v39 = vld [vmem:[#allocation10 + $0xe8] sm:$0xff]  }
  0xa0   : > { %2442 = vmatpush3.bf16.msra.mxu0 %v2797_v23  ;;  %v2825_v23 = vld [vmem:[#allocation10 + $0x50] sm:$0xff]   ;;  %v2842_v41 = vld [vmem:[#allocation10 + $0xa8] sm:$0xff]  }
  0xa1   : > { %2470 = vmatpush3.bf16.msra.mxu1 %v2798_v24  ;;  %2443 = vmatprep.subr.bf16.mxu0 %v2799_v25  ;;  %v457_v46 = vld [vmem:[#allocation2 + $0xc] sm:$0x3]  ;;  %v2826_v24 = vld [vmem:[#allocation10 + $0x88] sm:$0xff]   ;;  %v2827_v25 = vld [vmem:[#allocation10 + $0x10] sm:$0xff]  }
  0xa2   : > { %2471 = vmatprep.subr.bf16.mxu1 %v2800_v26  ;;  %v456_v47 = vld [vmem:[#allocation2 + $0x8] sm:$0xf]  ;;  %v2807_v48 = vld [vmem:[#allocation2] sm:$0xff]   ;;  %v2828_v26 = vld [vmem:[#allocation10 + $0xd0] sm:$0xff]  }
  0xa3   : > { %v2272_v49 = vcombine.low %v456_v47, %v457_v46  ;;  %v473_v50 = vshrl.u32 %v2807_v48, 16  ;;  %v475_v51 = vshll.u32 %v2807_v48, 16  ;;  %v490_v54 = vrot.slane %v2807_v48, 1  ;;  %v2847_v46 = vld [vmem:[#allocation10 + $0x38] sm:$0xff]  }
  0xa4   : > { %2444 = vmatpush3.bf16.msra.mxu0 %v2801_v27  ;;  %v506_v55 = vrot.slane %v2807_v48, 2  ;;  %v2271_v10 = vcombine.low %v456_v47, %v456_v47  ;;  %v2829_v27 = vld [vmem:[#allocation10 + $0x58] sm:$0xff]  }
  0xa5   : > { %2472 = vmatpush3.bf16.msra.mxu1 %v2802_v28  ;;  %2445 = vmatprep.subr.bf16.mxu0 %v2803_v29  ;;  %v480_v52 = vshll.u32 %v2272_v49, 16  ;;  %v484_v53 = vshrl.u32 %v2272_v49, 16  ;;  %v477_v56 = vrot.slane %v475_v51, 1  ;;  %v496_v57 = vrot.slane %v473_v50, 1  ;;  %v2830_v28 = vld [vmem:[#allocation10 + $0x90] sm:$0xff]   ;;  %v2831_v29 = vld [vmem:[#allocation10 + $0x18] sm:$0xff]  }
  0xa6   : > { %2473 = vmatprep.subr.bf16.mxu1 %v2804_v30  ;;  %v497_v58 = vrot.slane %v475_v51, 2  ;;  %v491_v59 = vrot.slane %v2272_v49, 1  ;;  %v507_v63 = vrot.slane %v2272_v49, 2  ;;  %v2832_v30 = vld [vmem:[#allocation10 + $0xd8] sm:$0xff]   ;;  %v3411_v49 = vld [vmem:[#allocation10 + $0x100] sm:$0xff]  }
  0xa7   : > { %v482_v60 = vrot.slane %v480_v52, 1  ;;  %v499_v61 = vrot.slane %v484_v53, 1  ;;  %v500_v62 = vrot.slane %v480_v52, 2  ;;  %v478_v0 = vor.u32 %v477_v56, %v473_v50  ;;  %v2848_v47 = vld [vmem:[#allocation10 + $0xf8] sm:$0xff]  }
  0xa8   : > { %2446 = vmatpush3.bf16.msra.mxu0 %v2805_v31  ;;  %v498_v1 = vor.u32 %v497_v58, %v496_v57  ;;  %v492_v5 = vsel %vm489_vm4, %v490_v54, %v491_v59  ;;  %v508_v11 = vsel %vm505_vm6, %v506_v55, %v507_v63  ;;  %v2833_v31 = vld [vmem:[#allocation10 + $0x60] sm:$0xff]  }
  0xa9   : > { %2474 = vmatpush3.bf16.msra.mxu1 %v2806_v32  ;;  %2629 = vmatprep.subr.bf16.mxu0 %v2809_v40  ;;  %v501_v3 = vor.u32 %v500_v62, %v499_v61  ;;  %v483_v4 = vsel %vm471_vm3, %v478_v0, %v482_v60  ;;  %v486_v6 = vor.u32 %v484_v53, %v482_v60  ;;  %v2834_v32 = vld [vmem:[#allocation10 + $0x98] sm:$0xff]  }
  0xaa   : > { %863 = vmatprep.mubr.bf16.mxu0 %v483_v4  ;;  %2497 = vmatprep.subr.bf16.mxu1 %v2818_v16 }
  0xab   : > { %v502_v7 = vsel %vm495_vm5, %v498_v1, %v501_v3  ;;  %864 = vmatmul.mubr.bf16.vlgmr.msra.gmra.mrb[0].mxu0 %v2807_v48  ;;  %v2851_v48 = vld [vmem:[#allocation10 + $0xb8] sm:$0xff]  }
  0xac   : > { %911 = vmatprep.mubr.bf16.mxu1 %v502_v7  ;;  %2630 = vmatpush3.bf16.msra.mxu0 %v2809_v40  ;;  %v2841_v40 = vld [vmem:[#allocation10 + $0x70] sm:$0xff]  }
  0xad   : > { %912 = vmatmul.mubr.bf16.vlgmr.msra.gmra.mrb[0].mxu1 %v492_v5  ;;  %2631 = vmatprep.subr.bf16.mxu0 %v2810_v2 }
  0xae   : > { %871 = vmatprep.mubr.bf16.mxu0 %v486_v6  ;;  %919 = vmatprep.mubr.bf16.mxu1 %v501_v3 }
  0xaf   : > { %2498 = vmatpush3.bf16.msra.mxu1 %v2819_v17 }
  0xb0   : > { %2632 = vmatpush3.bf16.msra.mxu0 %v2810_v2  ;;  %2499 = vmatprep.subr.bf16.mxu1 %v2821_v19 }
  0xb1   : > { %2633 = vmatprep.subr.bf16.mxu0 %v2811_v8 }
  0xb3   : > { %872 = vmatmul.mubr.bf16.gmra.mrb[4].mxu0 %v2271_v10  ;;  %2500 = vmatpush3.bf16.msra.mxu1 %v2823_v21 }
  0xb4   : > { %2634 = vmatpush3.bf16.msra.mxu0 %v2811_v8  ;;  %2645 = vmatprep.mubr.bf16.mxu0 %v508_v11 }
  0xb5   : > { %920 = vmatmul.mubr.bf16.gmra.mrb[4].mxu1 %v491_v59  ;;  %2635 = vmatprep.subr.bf16.mxu0 %v2812_v9 }
  0xb6   : > { %2501 = vmatprep.subr.bf16.mxu1 %v2825_v23 }
  0xb7   : > { %2502 = vmatpush3.bf16.msra.mxu1 %v2827_v25 }
  0xb8   : > { %2636 = vmatpush3.bf16.msra.mxu0 %v2812_v9  ;;  %2503 = vmatprep.subr.bf16.mxu1 %v2829_v27 }
  0xb9   : > { %2637 = vmatprep.subr.bf16.mxu0 %v2813_v12 }
  0xbb   : > { %2504 = vmatpush3.bf16.msra.mxu1 %v2831_v29 }
  0xbc   : > { %2638 = vmatpush3.bf16.msra.mxu0 %v2813_v12  ;;  %2505 = vmatprep.subr.bf16.mxu1 %v2833_v31  ;;  %v2313_v12 = vld [vmem:[%s3507_s2] ss:$0 sm:$0xff] }
  0xbd   : > { %2639 = vmatprep.subr.bf16.mxu0 %v2814_v13 }
  0xbf   : > { %2506 = vmatpush3.bf16.msra.mxu1 %v2835_v33 }
  0xc0   : > { %2640 = vmatpush3.bf16.msra.mxu0 %v2814_v13  ;;  %2507 = vmatprep.subr.bf16.mxu1 %v2837_v35 }
  0xc1   : > { %2641 = vmatprep.subr.bf16.mxu0 %v2816_v14 }
  0xc3   : > { %2508 = vmatpush3.bf16.msra.mxu1 %v2839_v38 }
  0xc4   : > { %2642 = vmatpush3.bf16.msra.mxu0 %v2816_v14  ;;  %2509 = vmatprep.subr.bf16.mxu1 %v2841_v40 }
  0xc5   : > { %2643 = vmatprep.subr.bf16.mxu0 %v2817_v15 }
  0xc7   : > { %2510 = vmatpush3.bf16.msra.mxu1 %v2843_v42 }
  0xc8   : > { %2644 = vmatpush3.bf16.msra.mxu0 %v2817_v15  ;;  %2511 = vmatprep.subr.bf16.mxu1 %v2845_v44  ;;  %v2314_v15 = vld [vmem:[%s3508_s3] ss:$0 sm:$0xff] }
  0xc9   : > { %2525 = vmatprep.subr.bf16.mxu0 %v2820_v18 }
  0xcb   : > { %2646 = vmatmul.mubr.bf16.vlgmr.msra.gmra.mrb[8].mxu0 %v507_v63  ;;  %2512 = vmatpush3.bf16.msra.mxu1 %v2847_v46 }
  0xcc   : > { %2526 = vmatpush3.bf16.msra.mxu0 %v2822_v20  ;;  %2649 = vmatprep.subr.bf16.mxu1 %v3411_v49 }
  0xcd   : > { %2527 = vmatprep.subr.bf16.mxu0 %v2824_v22 }
  0xd0   : > { %2528 = vmatpush3.bf16.msra.mxu0 %v2826_v24 }
  0xd1   : > { %2529 = vmatprep.subr.bf16.mxu0 %v2828_v26 }
  0xd4   : > { %2530 = vmatpush3.bf16.msra.mxu0 %v2830_v28 }
  0xd5   : > { %2531 = vmatprep.subr.bf16.mxu0 %v2832_v30 }
  0xd8   : > { %2532 = vmatpush3.bf16.msra.mxu0 %v2834_v32 }
  0xd9   : > { %2533 = vmatprep.subr.bf16.mxu0 %v2836_v34 }
  0xdc   : > { %2534 = vmatpush3.bf16.msra.mxu0 %v2838_v37 }
  0xdd   : > { %2535 = vmatprep.subr.bf16.mxu0 %v2840_v39 }
  0xe0   : > { %2536 = vmatpush3.bf16.msra.mxu0 %v2842_v41 }
  0xe1   : > { %2537 = vmatprep.subr.bf16.mxu0 %v2844_v43 }
  0xe4   : > { %2538 = vmatpush3.bf16.msra.mxu0 %v2846_v45 }
  0xe5   : > { %2539 = vmatprep.subr.bf16.mxu0 %v2848_v47 }
  0xe8   : > { %2540 = vmatpush3.bf16.msra.mxu0 %v2851_v48 }
 0x17e   : > { %v2447_v50 = vpop.f32.mrb[0].mxu0 }
 0x17f   : > { %v2448_v52 = vpop.f32.mrb[1].mxu0 }
 0x180   : > { %v2475_v51 = vpop.f32.mrb[0].mxu1  ;;  %v2449_v53 = vadd.f32 %v2448_v52, %v2447_v50  ;;  %v2450_v55 = vpop.f32.mrb[2].mxu0 }
 0x181   : > { %v2476_v54 = vpop.f32.mrb[1].mxu1  ;;  %v2451_v58 = vpop.f32.mrb[3].mxu0 }
 0x182   : > { %v2477_v56 = vadd.f32 %v2476_v54, %v2475_v51  ;;  %v2478_v57 = vpop.f32.mrb[2].mxu1  ;;  %v2452_v59 = vadd.f32 %v2451_v58, %v2450_v55 }
 0x183   : > { %v2479_v60 = vpop.f32.mrb[3].mxu1 }
 0x184   : > { %v2480_v61 = vadd.f32 %v2479_v60, %v2478_v57  ;;  %v914_v62 = vadd.f32 %v2477_v56, %v2449_v53 }
 0x186   : > { %v917_v63 = vadd.f32 %v2480_v61, %v2452_v59  ;;  %v2453_v0 = vpop.f32.mrb[4].mxu0 }
 0x187   : > { %v2454_v1 = vpop.f32.mrb[5].mxu0 }
 0x188   : > { %v2481_v2 = vpop.f32.mrb[4].mxu1  ;;  %v2455_v3 = vadd.f32 %v2454_v1, %v2453_v0  ;;  %v2456_v4 = vpop.f32.mrb[6].mxu0 }
 0x189   : > { %v2482_v5 = vpop.f32.mrb[5].mxu1  ;;  %v2457_v6 = vpop.f32.mrb[7].mxu0 }
 0x18a   : > { %v2483_v7 = vadd.f32 %v2482_v5, %v2481_v2  ;;  %v2484_v8 = vpop.f32.mrb[6].mxu1  ;;  %v2854_v2 = vld [vmem:[#allocation10 + $0x110] sm:$0xff]   ;;  %v2856_v6 = vld [vmem:[#allocation10 + $0x118] sm:$0xff]  }
 0x18b   : > { %v2485_v9 = vpop.f32.mrb[7].mxu1  ;;  %v2858_v8 = vld [vmem:[#allocation10 + $0x128] sm:$0xff]  }
 0x18c   : > { %v922_v10 = vadd.f32 %v2483_v7, %v2455_v3  ;;  %v2859_v9 = vld [vmem:[#allocation10 + $0x130] sm:$0xff]  }
 0x19e   : > { %v2647_v11 = vpop.f32.mrb[8].mxu0 }
 0x19f   : > { %v970_v13 = vadd.f32 %v2647_v11, %v922_v10  ;;  %v961_v14 = vpop.f32.mrb[9].mxu0  ;;  %v2860_v10 = vld [vmem:[#allocation10 + $0x138] sm:$0xff]   ;;  %v2861_v11 = vld [vmem:[#allocation11 + $0x40] sm:$0xff]  }
 0x1a0   : > { %v962_v16 = vadd.f32 %v961_v14, %v914_v62  ;;  %v2648_v17 = vpop.f32.mrb[10].mxu0  ;;  %v2853_v62 = vld [vmem:[#allocation10 + $0x108] sm:$0xff]   ;;  %2563 = vmatprep.subr.bf16.mxu0 %v2861_v11 }
 0x1a1   : > { %v984_v18 = vmul.f32 %v2313_v12, %v970_v13  ;;  %v964_v19 = vpop.f32.mrb[11].mxu0  ;;  %v2863_v13 = vld [vmem:[#allocation11 + $0xc0] sm:$0xff]   ;;  %v2864_v14 = vld [vmem:[#allocation11 + $0x48] sm:$0xff]  }
 0x1a2   : > { %v982_v20 = vmul.f32 %v2313_v12, %v962_v16  ;;  %v965_v21 = vadd.f32 %v964_v19, %v917_v63  ;;  %v2866_v16 = vld [vmem:[#allocation11 + $0x8] sm:$0xff]  }
 0x1a3   : > { %v994_v22 = vadd.f32 %v2314_v15, %v984_v18  ;;  %v2867_v17 = vld [vmem:[#allocation11 + $0xc8] sm:$0xff]   ;;  %v2868_v18 = vld [vmem:[#allocation11 + $0x50] sm:$0xff]  }
 0x1a4   : > { %v992_v23 = vadd.f32 %v2314_v15, %v982_v20  ;;  %v983_v24 = vmul.f32 %v2313_v12, %v965_v21  ;;  %v2862_v12 = vld [vmem:[#allocation11] sm:$0xff]   ;;  %v2869_v19 = vld [vmem:[#allocation11 + $0x88] sm:$0xff]   ;;  %v2870_v20 = vld [vmem:[#allocation11 + $0x10] sm:$0xff]  }
 0x1a5   : > { %2904 = vtanh.f32 %v994_v22  ;;  %v2871_v21 = vld [vmem:[#allocation11 + $0xd0] sm:$0xff]   ;;  %v2872_v22 = vld [vmem:[#allocation11 + $0x58] sm:$0xff]  }
 0x1a6   : > { %2906 = vtanh.f32 %v992_v23  ;;  %v993_v25 = vadd.f32 %v2314_v15, %v983_v24  ;;  %v2865_v15 = vld [vmem:[#allocation11 + $0x80] sm:$0xff]   ;;  %v2873_v23 = vld [vmem:[#allocation11 + $0x90] sm:$0xff]   ;;  %v2874_v24 = vld [vmem:[#allocation11 + $0x18] sm:$0xff]  }
 0x1a8   : > { %2908 = vtanh.f32 %v993_v25  ;;  %v2875_v25 = vld [vmem:[#allocation11 + $0xd8] sm:$0xff]  }
 0x1af   : > { %v2905_v26 = vpop.eup %2904 }
 0x1b0   : > { %v2907_v27 = vpop.eup %2906  ;;  %v2419_v28 = vpack.c.bf16 %v2905_v26, %v2905_v26  ;;  %v2876_v26 = vld [vmem:[#allocation11 + $0x60] sm:$0xff]  }
 0x1b1   : > { %v2417_v29 = vpack.c.bf16 %v2907_v27, %v2907_v27  ;;  %v2877_v27 = vld [vmem:[#allocation11 + $0x98] sm:$0xff]  }
 0x1b2   : > { %v2909_v30 = vpop.eup %2908  ;;  %v1013_v31 = vrot.slane %v2419_v28, 7  ;;  %v2878_v28 = vld [vmem:[#allocation11 + $0x20] sm:$0xff]  }
 0x1b3   : > { %v1008_v32 = vrot.slane %v2417_v29, 7  ;;  %v2418_v33 = vpack.c.bf16 %v2909_v30, %v2909_v30  ;;  %v2879_v29 = vld [vmem:[#allocation11 + $0xe0] sm:$0xff]   ;;  %v2880_v30 = vld [vmem:[#allocation11 + $0x68] sm:$0xff]  }
 0x1b4   : > { %v1015_v34 = vrot.slane %v1013_v31, 4 }
 0x1b5   : > { %v1009_v35 = vrot.slane %v1008_v32, 4  ;;  %1020 = vst [vmem:[#allocation3] sm:$0xe] %v1008_v32  ;;  %v1010_v37 = vrot.slane %v2418_v33, 7  ;;  %v2882_v32 = vld [vmem:[#allocation11 + $0x28] sm:$0xff]  }
 0x1b6   : > { %1023 = vst [vmem:[#allocation3 + $0xc] sm:$0x1] %v1015_v34  ;;  %v2883_v33 = vld [vmem:[#allocation11 + $0xe8] sm:$0xff]   ;;  %v2884_v34 = vld [vmem:[#allocation11 + $0x70] sm:$0xff]  }
 0x1b7   : > { %v1011_v38 = vsel %vm3399_vm2, %v1009_v35, %v1010_v37  ;;  %v1012_v39 = vrot.slane %v1010_v37, 4  ;;  %v2885_v35 = vld [vmem:[#allocation11 + $0xa8] sm:$0xff]   ;;  %v2886_v37 = vld [vmem:[#allocation11 + $0x30] sm:$0xff]  }
 0x1b8   : > { %1021 = vst [vmem:[#allocation3 + $0x4] sm:$0xf] %v1011_v38  ;;  %v2887_v38 = vld [vmem:[#allocation11 + $0xf0] sm:$0xff]  }
 0x1b9   : > { %v1014_v40 = vsel %vm3399_vm2, %v1012_v39, %v1013_v31  ;;  %v2881_v31 = vld [vmem:[#allocation11 + $0xa0] sm:$0xff]   ;;  %v2888_v39 = vld [vmem:[#allocation11 + $0x78] sm:$0xff]  }
 0x1ba   : > { %1022 = vst [vmem:[#allocation3 + $0x8] sm:$0xf] %v1014_v40  ;;  %v2889_v40 = vld [vmem:[#allocation11 + $0xb0] sm:$0xff]  }
 0x1bd   : > { %v1027_v43 = vld [vmem:[#allocation3 + $0xc] sm:$0x3] }
 0x1bf   : > { %v2849_v41 = vld [vmem:[#allocation3] sm:$0xff]  }
 0x1c0   : > { %v1042_v44 = vshrl.u32 %v2849_v41, 16  ;;  %v1044_v45 = vshll.u32 %v2849_v41, 16  ;;  %v1058_v0 = vrot.slane %v2849_v41, 1  ;;  %v1072_v5 = vrot.slane %v2849_v41, 2 }
 0x1c1   : > { %v1026_v42 = vld [vmem:[#allocation3 + $0x8] sm:$0xf] }
 0x1c2   : > { %v2320_v46 = vcombine.low %v1026_v42, %v1027_v43  ;;  %v1046_v47 = vrot.slane %v1044_v45, 1  ;;  %v1063_v51 = vrot.slane %v1042_v44, 1  ;;  %v1064_v52 = vrot.slane %v1044_v45, 2  ;;  %v2894_v43 = vld [vmem:[#allocation11 + $0xb8] sm:$0xff]  }
 0x1c3   : > { %v2319_v4 = vcombine.low %v1026_v42, %v1026_v42  ;;  %v2891_v42 = vld [vmem:[#allocation11 + $0xf8] sm:$0xff]  }
 0x1c4   : > { %v1049_v48 = vshll.u32 %v2320_v46, 16  ;;  %v1053_v50 = vshrl.u32 %v2320_v46, 16  ;;  %v1047_v53 = vor.u32 %v1046_v47, %v1042_v44  ;;  %v1059_v57 = vrot.slane %v2320_v46, 1  ;;  %v3429_v44 = vld [vmem:[#allocation11 + $0x100] sm:$0xff]  }
 0x1c5   : > { %v1065_v60 = vor.u32 %v1064_v52, %v1063_v51  ;;  %v1073_v3 = vrot.slane %v2320_v46, 2 }
 0x1c6   : > { %v1051_v54 = vrot.slane %v1049_v48, 1  ;;  %v1066_v55 = vrot.slane %v1053_v50, 1  ;;  %v1067_v56 = vrot.slane %v1049_v48, 2  ;;  %v1060_v1 = vsel %vm489_vm4, %v1058_v0, %v1059_v57 }
 0x1c7   : > { %v1074_v7 = vsel %vm505_vm6, %v1072_v5, %v1073_v3 }
 0x1c8   : > { %v1052_v58 = vsel %vm471_vm3, %v1047_v53, %v1051_v54  ;;  %v1055_v59 = vor.u32 %v1053_v50, %v1051_v54  ;;  %v1068_v61 = vor.u32 %v1067_v56, %v1066_v55 }
 0x1c9   : > { %1429 = vmatprep.mubr.bf16.mxu1 %v1052_v58 }
 0x1ca   : > { %1430 = vmatmul.mubr.bf16.vlgmr.msra.gmra.mrb[8].mxu1 %v2849_v41  ;;  %v1069_v63 = vsel %vm495_vm5, %v1065_v60, %v1068_v61  ;;  %v2890_v41 = vld [vmem:[#allocation11 + $0x38] sm:$0xff]  }
 0x1cb   : > { %2650 = vmatpush3.bf16.msra.mxu1 %v3411_v49  ;;  %1437 = vmatprep.mubr.bf16.mxu1 %v1055_v59  ;;  %v2857_v49 = vld [vmem:[#allocation10 + $0x120] sm:$0xff]  }
 0x1cc   : > { %1477 = vmatprep.mubr.bf16.mxu0 %v1069_v63  ;;  %2651 = vmatprep.subr.bf16.mxu1 %v2853_v62 }
 0x1cd   : > { %1478 = vmatmul.mubr.bf16.vlgmr.msra.gmra.mrb[12].mxu0 %v1060_v1 }
 0x1ce   : > { %1485 = vmatprep.mubr.bf16.mxu0 %v1068_v61  ;;  %2564 = vmatpush3.bf16.msra.mxu0 %v2862_v12 }
 0x1cf   : > { %2652 = vmatpush3.bf16.msra.mxu1 %v2853_v62  ;;  %2565 = vmatprep.subr.bf16.mxu0 %v2864_v14 }
 0x1d0   : > { %2653 = vmatprep.subr.bf16.mxu1 %v2854_v2 }
 0x1d2   : > { %1438 = vmatmul.mubr.bf16.gmra.mrb[12].mxu1 %v2319_v4  ;;  %2566 = vmatpush3.bf16.msra.mxu0 %v2866_v16 }
 0x1d3   : > { %2654 = vmatpush3.bf16.msra.mxu1 %v2854_v2  ;;  %2665 = vmatprep.mubr.bf16.mxu1 %v1074_v7 }
 0x1d4   : > { %2655 = vmatprep.subr.bf16.mxu1 %v2856_v6  ;;  %2567 = vmatprep.subr.bf16.mxu0 %v2868_v18 }
 0x1d5   : > { %1486 = vmatmul.mubr.bf16.gmra.mrb[16].mxu0 %v1059_v57 }
 0x1d6   : > { %2568 = vmatpush3.bf16.msra.mxu0 %v2870_v20 }
 0x1d7   : > { %2656 = vmatpush3.bf16.msra.mxu1 %v2856_v6  ;;  %2569 = vmatprep.subr.bf16.mxu0 %v2872_v22 }
 0x1d8   : > { %2657 = vmatprep.subr.bf16.mxu1 %v2857_v49 }
 0x1da   : > { %2570 = vmatpush3.bf16.msra.mxu0 %v2874_v24 }
 0x1db   : > { %2658 = vmatpush3.bf16.msra.mxu1 %v2857_v49  ;;  %2571 = vmatprep.subr.bf16.mxu0 %v2876_v26  ;;  %v2361_v49 = vld [vmem:[%s3510_s5] ss:$0 sm:$0xff] }
 0x1dc   : > { %2659 = vmatprep.subr.bf16.mxu1 %v2858_v8 }
 0x1de   : > { %2572 = vmatpush3.bf16.msra.mxu0 %v2878_v28 }
 0x1df   : > { %2660 = vmatpush3.bf16.msra.mxu1 %v2858_v8  ;;  %2573 = vmatprep.subr.bf16.mxu0 %v2880_v30 }
 0x1e0   : > { %2661 = vmatprep.subr.bf16.mxu1 %v2859_v9 }
 0x1e2   : > { %2574 = vmatpush3.bf16.msra.mxu0 %v2882_v32 }
 0x1e3   : > { %2662 = vmatpush3.bf16.msra.mxu1 %v2859_v9  ;;  %2575 = vmatprep.subr.bf16.mxu0 %v2884_v34 }
 0x1e4   : > { %2663 = vmatprep.subr.bf16.mxu1 %v2860_v10 }
 0x1e6   : > { %2576 = vmatpush3.bf16.msra.mxu0 %v2886_v37 }
 0x1e7   : > { %2664 = vmatpush3.bf16.msra.mxu1 %v2860_v10  ;;  %2577 = vmatprep.subr.bf16.mxu0 %v2888_v39  ;;  %v2362_v10 = vld [vmem:[%s3511_s6] ss:$0 sm:$0xff] }
 0x1e8   : > { %2591 = vmatprep.subr.bf16.mxu1 %v2863_v13 }
 0x1ea   : > { %2666 = vmatmul.mubr.bf16.vlgmr.msra.gmra.mrb[16].mxu1 %v1073_v3  ;;  %2578 = vmatpush3.bf16.msra.mxu0 %v2890_v41 }
 0x1eb   : > { %2592 = vmatpush3.bf16.msra.mxu1 %v2865_v15  ;;  %2669 = vmatprep.subr.bf16.mxu0 %v3429_v44 }
 0x1ec   : > { %2593 = vmatprep.subr.bf16.mxu1 %v2867_v17 }
 0x1ef   : > { %2594 = vmatpush3.bf16.msra.mxu1 %v2869_v19 }
 0x1f0   : > { %2595 = vmatprep.subr.bf16.mxu1 %v2871_v21 }
 0x1f3   : > { %2596 = vmatpush3.bf16.msra.mxu1 %v2873_v23 }
 0x1f4   : > { %2597 = vmatprep.subr.bf16.mxu1 %v2875_v25 }
 0x1f7   : > { %2598 = vmatpush3.bf16.msra.mxu1 %v2877_v27 }
 0x1f8   : > { %2599 = vmatprep.subr.bf16.mxu1 %v2879_v29 }
 0x1fb   : > { %2600 = vmatpush3.bf16.msra.mxu1 %v2881_v31 }
 0x1fc   : > { %2601 = vmatprep.subr.bf16.mxu1 %v2883_v33 }
 0x1ff   : > { %2602 = vmatpush3.bf16.msra.mxu1 %v2885_v35 }
 0x200   : > { %2603 = vmatprep.subr.bf16.mxu1 %v2887_v38 }
 0x203   : > { %2604 = vmatpush3.bf16.msra.mxu1 %v2889_v40 }
 0x204   : > { %2605 = vmatprep.subr.bf16.mxu1 %v2891_v42 }
 0x207   : > { %2606 = vmatpush3.bf16.msra.mxu1 %v2894_v43 }
 0x29d   : > { %v2513_v45 = vpop.f32.mrb[8].mxu1 }
 0x29e   : > { %v2514_v46 = vpop.f32.mrb[9].mxu1 }
 0x29f   : > { %v2515_v47 = vadd.f32 %v2514_v46, %v2513_v45  ;;  %v2516_v48 = vpop.f32.mrb[10].mxu1 }
 0x2a0   : > { %v2541_v50 = vpop.f32.mrb[12].mxu0  ;;  %v2517_v51 = vpop.f32.mrb[11].mxu1 }
 0x2a1   : > { %v2518_v52 = vadd.f32 %v2517_v51, %v2516_v48  ;;  %v2542_v53 = vpop.f32.mrb[13].mxu0 }
 0x2a2   : > { %v2543_v54 = vadd.f32 %v2542_v53, %v2541_v50  ;;  %v2544_v55 = vpop.f32.mrb[14].mxu0 }
 0x2a3   : > { %v2545_v56 = vpop.f32.mrb[15].mxu0 }
 0x2a4   : > { %v2546_v57 = vadd.f32 %v2545_v56, %v2544_v55  ;;  %v1480_v58 = vadd.f32 %v2543_v54, %v2515_v47 }
 0x2a5   : > { %v2519_v59 = vpop.f32.mrb[12].mxu1 }
 0x2a6   : > { %v2520_v60 = vpop.f32.mrb[13].mxu1  ;;  %v1483_v61 = vadd.f32 %v2546_v57, %v2518_v52  ;;  %v2896_v57 = vld [vmem:[#allocation11 + $0x108] sm:$0xff]  }
 0x2a7   : > { %v2521_v62 = vadd.f32 %v2520_v60, %v2519_v59  ;;  %v2522_v63 = vpop.f32.mrb[14].mxu1 }
 0x2a8   : > { %v2547_v0 = vpop.f32.mrb[16].mxu0  ;;  %v2523_v1 = vpop.f32.mrb[15].mxu1 }
 0x2a9   : > { %v2548_v2 = vpop.f32.mrb[17].mxu0  ;;  %v2899_v1 = vld [vmem:[#allocation11 + $0x118] sm:$0xff]  }
 0x2aa   : > { %v2549_v3 = vadd.f32 %v2548_v2, %v2547_v0  ;;  %v2550_v4 = vpop.f32.mrb[18].mxu0 }
 0x2ab   : > { %v2551_v5 = vpop.f32.mrb[19].mxu0  ;;  %v2902_v4 = vld [vmem:[#allocation11 + $0x130] sm:$0xff]  }
 0x2ac   : > { %v1488_v6 = vadd.f32 %v2549_v3, %v2521_v62  ;;  %v2901_v3 = vld [vmem:[#allocation11 + $0x128] sm:$0xff]   ;;  %v2903_v5 = vld [vmem:[#allocation11 + $0x138] sm:$0xff]  }
 0x2bd   : > { %v2667_v7 = vpop.f32.mrb[16].mxu1 }
 0x2be   : > { %v1536_v8 = vadd.f32 %v2667_v7, %v1488_v6  ;;  %v1527_v9 = vpop.f32.mrb[17].mxu1 }
 0x2bf   : > { %v1528_v11 = vadd.f32 %v1527_v9, %v1480_v58  ;;  %v2668_v12 = vpop.f32.mrb[18].mxu1 }
 0x2c0   : > { %v1550_v13 = vmul.f32 %v2361_v49, %v1536_v8  ;;  %v1530_v14 = vpop.f32.mrb[19].mxu1 }
 0x2c1   : > { %v1548_v15 = vmul.f32 %v2361_v49, %v1528_v11  ;;  %v1531_v16 = vadd.f32 %v1530_v14, %v1483_v61  ;;  %v2897_v61 = vld [vmem:[#allocation11 + $0x110] sm:$0xff]  }
 0x2c2   : > { %v1560_v17 = vadd.f32 %v2362_v10, %v1550_v13 }
 0x2c3   : > { %v1558_v18 = vadd.f32 %v2362_v10, %v1548_v15  ;;  %v1549_v19 = vmul.f32 %v2361_v49, %v1531_v16 }
 0x2c4   : > { %2910 = vtanh.f32 %v1560_v17 }
 0x2c5   : > { %2912 = vtanh.f32 %v1558_v18  ;;  %v1559_v20 = vadd.f32 %v2362_v10, %v1549_v19 }
 0x2c7   : > { %2914 = vtanh.f32 %v1559_v20 }
 0x2ce   : > { %v2911_v21 = vpop.eup %2910 }
 0x2cf   : > { %v2913_v22 = vpop.eup %2912  ;;  %v2422_v23 = vpack.c.bf16 %v2911_v21, %v2911_v21 }
 0x2d0   : > { %v2420_v24 = vpack.c.bf16 %v2913_v22, %v2913_v22 }
 0x2d1   : > { %v2915_v25 = vpop.eup %2914  ;;  %v1579_v26 = vrot.slane %v2422_v23, 7 }
 0x2d2   : > { %v1574_v27 = vrot.slane %v2420_v24, 7  ;;  %v2421_v28 = vpack.c.bf16 %v2915_v25, %v2915_v25 }
 0x2d3   : > { %v1581_v29 = vrot.slane %v1579_v26, 4 }
 0x2d4   : > { %v1575_v30 = vrot.slane %v1574_v27, 4  ;;  %1586 = vst [vmem:[#allocation4] sm:$0xe] %v1574_v27  ;;  %v1576_v31 = vrot.slane %v2421_v28, 7 }
 0x2d5   : > { %1589 = vst [vmem:[#allocation4 + $0xc] sm:$0x1] %v1581_v29 }
 0x2d6   : > { %v1577_v32 = vsel %vm3399_vm2, %v1575_v30, %v1576_v31  ;;  %v1578_v33 = vrot.slane %v1576_v31, 4  ;;  %v2409_v31 = vld [vmem:[%s3513_s8] ss:$0 sm:$0xff] }
 0x2d7   : > { %1587 = vst [vmem:[#allocation4 + $0x4] sm:$0xf] %v1577_v32 }
 0x2d8   : > { %v1580_v34 = vsel %vm3399_vm2, %v1578_v33, %v1579_v26 }
 0x2d9   : > { %1588 = vst [vmem:[#allocation4 + $0x8] sm:$0xf] %v1580_v34  ;;  %v2410_v34 = vld [vmem:[%s3546_s25] ss:$0 sm:$0xff] }
 0x2dc   : > { %v1593_v38 = vld [vmem:[#allocation4 + $0xc] sm:$0x3] }
 0x2de   : > { %v2892_v35 = vld [vmem:[#allocation4] sm:$0xff]  }
 0x2df   : > { %v1608_v39 = vshrl.u32 %v2892_v35, 16  ;;  %v1610_v40 = vshll.u32 %v2892_v35, 16  ;;  %v1624_v59 = vrot.slane %v2892_v35, 1  ;;  %v1638_v0 = vrot.slane %v2892_v35, 2 }
 0x2e0   : > { %v1592_v37 = vld [vmem:[#allocation4 + $0x8] sm:$0xf] }
 0x2e1   : > { %v2368_v41 = vcombine.low %v1592_v37, %v1593_v38  ;;  %v1612_v42 = vrot.slane %v1610_v40, 1  ;;  %v1629_v46 = vrot.slane %v1608_v39, 1  ;;  %v1630_v47 = vrot.slane %v1610_v40, 2 }
 0x2e2   : > { %v2367_v63 = vcombine.low %v1592_v37, %v1592_v37 }
 0x2e3   : > { %v1615_v43 = vshll.u32 %v2368_v41, 16  ;;  %v1619_v45 = vshrl.u32 %v2368_v41, 16  ;;  %v1613_v48 = vor.u32 %v1612_v42, %v1608_v39  ;;  %v1625_v53 = vrot.slane %v2368_v41, 1 }
 0x2e4   : > { %v1631_v55 = vor.u32 %v1630_v47, %v1629_v46  ;;  %v1639_v62 = vrot.slane %v2368_v41, 2 }
 0x2e5   : > { %v1617_v50 = vrot.slane %v1615_v43, 1  ;;  %v1632_v51 = vrot.slane %v1619_v45, 1  ;;  %v1633_v52 = vrot.slane %v1615_v43, 2  ;;  %v1626_v60 = vsel %vm489_vm4, %v1624_v59, %v1625_v53 }
 0x2e6   : > { %v1640_v2 = vsel %vm505_vm6, %v1638_v0, %v1639_v62 }
 0x2e7   : > { %v1618_v36 = vsel %vm471_vm3, %v1613_v48, %v1617_v50  ;;  %v1621_v54 = vor.u32 %v1619_v45, %v1617_v50  ;;  %v1634_v56 = vor.u32 %v1633_v52, %v1632_v51 }
 0x2e8   : > { %1995 = vmatprep.mubr.bf16.mxu0 %v1618_v36 }
 0x2e9   : > { %1996 = vmatmul.mubr.bf16.vlgmr.msra.gmra.mrb[20].mxu0 %v2892_v35  ;;  %v1635_v58 = vsel %vm495_vm5, %v1631_v55, %v1634_v56 }
 0x2ea   : > { %2670 = vmatpush3.bf16.msra.mxu0 %v3429_v44  ;;  %2003 = vmatprep.mubr.bf16.mxu0 %v1621_v54  ;;  %v2900_v44 = vld [vmem:[#allocation11 + $0x120] sm:$0xff]  }
 0x2eb   : > { %2043 = vmatprep.mubr.bf16.mxu1 %v1635_v58  ;;  %2671 = vmatprep.subr.bf16.mxu0 %v2896_v57 }
 0x2ec   : > { %2044 = vmatmul.mubr.bf16.vlgmr.msra.gmra.mrb[20].mxu1 %v1626_v60 }
 0x2ed   : > { %2051 = vmatprep.mubr.bf16.mxu1 %v1634_v56 }
 0x2ee   : > { %2672 = vmatpush3.bf16.msra.mxu0 %v2896_v57 }
 0x2ef   : > { %2673 = vmatprep.subr.bf16.mxu0 %v2897_v61 }
 0x2f1   : > { %2004 = vmatmul.mubr.bf16.gmra.mrb[24].mxu0 %v2367_v63 }
 0x2f2   : > { %2674 = vmatpush3.bf16.msra.mxu0 %v2897_v61  ;;  %2685 = vmatprep.mubr.bf16.mxu0 %v1640_v2 }
 0x2f3   : > { %2675 = vmatprep.subr.bf16.mxu0 %v2899_v1 }
 0x2f4   : > { %2052 = vmatmul.mubr.bf16.gmra.mrb[24].mxu1 %v1625_v53 }
 0x2f6   : > { %2676 = vmatpush3.bf16.msra.mxu0 %v2899_v1 }
 0x2f7   : > { %2677 = vmatprep.subr.bf16.mxu0 %v2900_v44 }
 0x2fa   : > { %2678 = vmatpush3.bf16.msra.mxu0 %v2900_v44 }
 0x2fb   : > { %2679 = vmatprep.subr.bf16.mxu0 %v2901_v3 }
 0x2fe   : > { %2680 = vmatpush3.bf16.msra.mxu0 %v2901_v3 }
 0x2ff   : > { %2681 = vmatprep.subr.bf16.mxu0 %v2902_v4 }
 0x302   : > { %2682 = vmatpush3.bf16.msra.mxu0 %v2902_v4 }
 0x303   : > { %2683 = vmatprep.subr.bf16.mxu0 %v2903_v5 }
 0x306   : > { %2684 = vmatpush3.bf16.msra.mxu0 %v2903_v5 }
 0x309   : > { %2686 = vmatmul.mubr.bf16.vlgmr.msra.gmra.mrb[28].mxu0 %v1639_v62 }
 0x3bc   : > { %v2579_v6 = vpop.f32.mrb[20].mxu0 }
 0x3bd   : > { %v2580_v7 = vpop.f32.mrb[21].mxu0 }
 0x3be   : > { %v2581_v49 = vadd.f32 %v2580_v7, %v2579_v6  ;;  %v2582_v8 = vpop.f32.mrb[22].mxu0 }
 0x3bf   : > { %v2607_v9 = vpop.f32.mrb[20].mxu1  ;;  %v2583_v10 = vpop.f32.mrb[23].mxu0 }
 0x3c0   : > { %v2584_v11 = vadd.f32 %v2583_v10, %v2582_v8  ;;  %v2608_v12 = vpop.f32.mrb[21].mxu1 }
 0x3c1   : > { %v2609_v13 = vadd.f32 %v2608_v12, %v2607_v9  ;;  %v2610_v14 = vpop.f32.mrb[22].mxu1 }
 0x3c2   : > { %v2611_v15 = vpop.f32.mrb[23].mxu1 }
 0x3c3   : > { %v2612_v16 = vadd.f32 %v2611_v15, %v2610_v14  ;;  %v2046_v17 = vadd.f32 %v2609_v13, %v2581_v49 }
 0x3c4   : > { %v2585_v18 = vpop.f32.mrb[24].mxu0 }
 0x3c5   : > { %v2586_v19 = vpop.f32.mrb[25].mxu0  ;;  %v2049_v20 = vadd.f32 %v2612_v16, %v2584_v11 }
 0x3c6   : > { %v2587_v21 = vadd.f32 %v2586_v19, %v2585_v18  ;;  %v2588_v22 = vpop.f32.mrb[26].mxu0 }
 0x3c7   : > { %v2613_v23 = vpop.f32.mrb[24].mxu1  ;;  %v2589_v24 = vpop.f32.mrb[27].mxu0 }
 0x3c8   : > { %v2614_v25 = vpop.f32.mrb[25].mxu1 }
 0x3c9   : > { %v2615_v26 = vadd.f32 %v2614_v25, %v2613_v23  ;;  %v2616_v27 = vpop.f32.mrb[26].mxu1 }
 0x3ca   : > { %v2617_v28 = vpop.f32.mrb[27].mxu1 }
 0x3cb   : > { %v2054_v29 = vadd.f32 %v2615_v26, %v2587_v21 }
 0x3dc   : > { %v2687_v30 = vpop.f32.mrb[28].mxu0 }
 0x3dd   : > { %v2102_v32 = vadd.f32 %v2687_v30, %v2054_v29  ;;  %v2093_v33 = vpop.f32.mrb[29].mxu0 }
 0x3de   : > { %v2094_v35 = vadd.f32 %v2093_v33, %v2046_v17  ;;  %v2688_v37 = vpop.f32.mrb[30].mxu0 }
 0x3df   : > { %v2116_v38 = vmul.f32 %v2409_v31, %v2102_v32  ;;  %v2096_v39 = vpop.f32.mrb[31].mxu0 }
 0x3e0   : > { %v2114_v40 = vmul.f32 %v2409_v31, %v2094_v35  ;;  %v2097_v41 = vadd.f32 %v2096_v39, %v2049_v20 }
 0x3e1   : > { %v2126_v42 = vadd.f32 %v2410_v34, %v2116_v38 }
 0x3e2   : > { %v2115_v43 = vmul.f32 %v2409_v31, %v2097_v41  ;;  %v2124_v46 = vadd.f32 %v2410_v34, %v2114_v40 }
 0x3e3   : > { %v2425_v45 = vpack.c.bf16 %v2126_v42, %v2126_v42 }
 0x3e4   : > { %v2125_v47 = vadd.f32 %v2410_v34, %v2115_v43 }
 0x3e5   : > { %2142 = vst [vmem:[%s421_s19 + $0x8] sm:$0xf] %v2425_v45 }
 0x3e6   : > { %v2429_v48 = vpack.c.bf16 %v2125_v47, %v2124_v46 }
 0x3e8   : > { %2430 = vst [vmem:[%s421_s19] sm:$0xff] %v2429_v48  }
 0x3e9   : > { %3043 = shalt.err (!%p3040_p4)
}
 0x3ea   : > { %s3044_s10 = scalar_lea.hbm %s3461_s28, 192  ;;  %s3048_s19 = scalar_lea.hbm %s3547_s12, 384 }
 0x3eb   : > { %p3045_p9 = scmp.ne.s32.totalorder %s3461_s28, %s3044_s10  ;;  %p3049_p8 = scmp.lt.u32.totalorder %s3461_s28, %s3547_s12 }
 0x3ec   : > { %p3050_p13 = scmp.lt.u32.totalorder %s3048_s19, %s3044_s10  ;;  %p3052_p10 = scmp.lt.u32.totalorder %s3044_s10, %s3461_s28 }
 0x3ed   : > { %p3046_p0 = pnand %p3045_p9, %p3325_p5 }
 0x3ee   : > { %p3051_p6 = por %p3050_p13, %p3049_p8 }
 0x3ef   : > { %p3047_p11 = pneg %p3046_p0 }
 0x3f0   : > { %p3053_p3 = por %p3052_p10, %p3051_p6 }
 0x3f2   : > { %p3054_p7 = pnand %p3053_p3, %p3047_p11 }
 0x3f4   : > { %3057 = shalt.err (!%p3054_p7)
}
 0x3f5   : > { %s3114_s24 = smov 64   ;;  %s3115_s26 = smov 4  }
 0x3f6   : > { %2707 = dma.vmem_to_hbm [thread:$0]  (%p3325_p5), %s3456_s21, 192, %s3461_s28, %s2144_s27, %s3114_s24, %s3114_s24, %s3115_s26  }
 0x3f7 PF: > { %s3548_s17 = sld [smem:[#allocation18_spill]]  ;;  %s3549_s30 = sld [smem:[#allocation19_spill]] }
 0x3f8   : > { %p3551_p1 = scmp.ge.s32.totalorder %s3104_s16, 2 }
 0x3fd   : > { %s2172_s11 = sand.u32 1, %s3548_s17   ;;  %p3550_p12 = scmp.ne.s32.totalorder %s3549_s30, 0 }
 0x3fe   : > { %s2173_s10 = scalar_lea.sflag [#allocation7], %s2172_s11 }
 0x3ff   : > { %p2724_p2 = pnand %p3551_p1, %p3550_p12 }
 0x401   : > { %3087 = dma.done.wait (!%p2724_p2), %s2173_s10, 192  }
 0x402   : > { %3089 = vsyncadd (!%p2724_p2), %s2173_s10, 4294967104  ;;  %s3552_s29 = smov %s3321_s13  ;;  %p25_p4 = scmp.ge.s32.totalorder %s3311_s22, 4  }
 0x403   : > { %s3553_s13 = smov %s3096_s14  ;;  %s3554_s14 = smov %s3100_s15 }
 0x404   : > { %s3555_s15 = smov %s3552_s29  ;;  %s3556_s16 = smov %s3311_s22 }
 0x405   :  { %27 = sbr.rel (!%p25_p4) target bundleno = 10 (0xa), region = 117 }
 0x40c   :  { %2178 = vsyncpa [#allocation6], 1 }
 0x40d   :  { %2180 = vsyncpa [#allocation6 + $0x1], 1 }
 0x40e   :  { %2181 = vsyncpa [#allocation9], 1 }
 0x40f   :  { %2182 = vsyncpa [#allocation12], 1 }
 0x410   :  { %2183 = vsyncpa [#allocation7], 1 }
 0x411   :  { %2185 = vsyncpa [#allocation7 + $0x1], 1 }

</bundles_post_ra>
